<compile_context>
chip_gen: v6e
topology: v6e:2x2x1
jax: 0.10.0
libtpu: 0.0.40
codegen_flags: <defaults>
</compile_context>

<pallas_src>
import functools

import jax
import jax.numpy as jnp
from jax.experimental import pallas as pl
from jax.experimental.pallas import tpu as pltpu

LAMBDA_IDENTITY = 0.1
LAMBDA_CYCLE = 10.0


def _generator_loss_kernel(
    ra_ref, rb_ref,                     # (N, C, TP) f32 VMEM tiles
    w_ab_ref, b_ab_ref,                 # SMEM (C, C), (C,)
    w_ba_ref, b_ba_ref,                 # SMEM (C, C), (C,)
    w_da_ref, b_da_ref,                 # SMEM (C,),   (1,)
    w_db_ref, b_db_ref,                 # SMEM (C,),   (1,)
    part_ref, fake_a_ref, fake_b_ref,   # outputs
    *, C, inv_adv_count, inv_l1_count,
):
    # Per-channel lane-dense (N, TP) slabs.
    rA = [ra_ref[:, k, :] for k in range(C)]
    rB = [rb_ref[:, k, :] for k in range(C)]

    def gen(x_ch, w_ref, b_ref):
        # 1x1 conv (C->C) + tanh, unrolled over the tiny channel dim (VPU FMAs,
        # scalar weights straight from SMEM; no MXU).
        out = []
        for co in range(C):
            acc = x_ch[0] * w_ref[co, 0]
            for k in range(1, C):
                acc = acc + x_ch[k] * w_ref[co, k]
            out.append(jnp.tanh(acc + b_ref[co]))
        return out

    def disc(x_ch, w_ref, b_ref):
        # 1x1 conv (C->1): per-pixel score, shape (N, TP).
        acc = x_ch[0] * w_ref[0]
        for k in range(1, C):
            acc = acc + x_ch[k] * w_ref[k]
        return acc + b_ref[0]

    def l1_acc(a_ch, b_ch):
        s = jnp.abs(a_ch[0] - b_ch[0])
        for k in range(1, C):
            s = s + jnp.abs(a_ch[k] - b_ch[k])
        return s

    # --- adversarial path: fakes + discriminator scores ---------------------
    fake_A = gen(rB, w_ba_ref, b_ba_ref)            # netG_BA(real_B)
    fake_B = gen(rA, w_ab_ref, b_ab_ref)            # netG_AB(real_A)
    for co in range(C):                             # write tanh results straight out
        fake_a_ref[:, co, :] = fake_A[co]
        fake_b_ref[:, co, :] = fake_B[co]

    d_fake_A = disc(fake_A, w_da_ref, b_da_ref)     # netD_A(fake_A)
    d_fake_B = disc(fake_B, w_db_ref, b_db_ref)     # netD_B(fake_B)
    adv_pp = (d_fake_A - 1.0) ** 2 + (d_fake_B - 1.0) ** 2      # (N, TP)

    # --- identity path -------------------------------------------------------
    id_A = gen(rA, w_ba_ref, b_ba_ref)              # netG_BA(real_A) vs real_A
    id_B = gen(rB, w_ab_ref, b_ab_ref)              # netG_AB(real_B) vs real_B
    id_pp = l1_acc(id_A, rA) + l1_acc(id_B, rB)     # (N, TP)

    # --- cycle-consistency path ----------------------------------------------
    cyc_A = gen(fake_B, w_ba_ref, b_ba_ref)         # netG_BA(fake_B) vs real_A
    cyc_B = gen(fake_A, w_ab_ref, b_ab_ref)         # netG_AB(fake_A) vs real_B
    cyc_pp = l1_acc(cyc_A, rA) + l1_acc(cyc_B, rB)  # (N, TP)

    # Per-pixel weighted contribution; each mean uses the GLOBAL element count,
    # so summing the per-tile partials outside reproduces the reference loss.
    contrib_pp = (adv_pp * inv_adv_count
                  + id_pp * (LAMBDA_IDENTITY * inv_l1_count)
                  + cyc_pp * (LAMBDA_CYCLE * inv_l1_count))
    contrib = jnp.sum(contrib_pp)
    part_ref[...] = jnp.full(part_ref.shape, contrib, dtype=jnp.float32)


def _pick_tile(P, N, C, budget_bytes=8 * 1024 * 1024):
    """Largest 128-multiple pixel tile dividing P with a bounded VMEM footprint."""
    if P % 128 != 0:
        # Tiny / irregular spatial size: single full block (block == full dim).
        # TODO(synk): pad+mask ragged pixel tiles if huge non-128-multiple P matters.
        return P
    best = 128
    tp = 128
    while tp <= P:
        # 4 big arrays (real_A, real_B, fake_A, fake_B), f32, double-buffered.
        if P % tp == 0 and 4 * (N * C * tp * 4) * 2 <= budget_bytes:
            best = tp
        tp += 128
    return best


def generator_loss(real_A_nchw, real_B_nchw, params):
    """Wrapper: NCHW -> (N, C, H*W) reshape (no transposes), tiled pallas_call."""
    N, C, H, W = real_A_nchw.shape
    P = H * W
    TP = _pick_tile(P, N, C)
    num_tiles = P // TP

    ra = real_A_nchw.reshape(N, C, P).astype(jnp.float32)
    rb = real_B_nchw.reshape(N, C, P).astype(jnp.float32)

    inv_adv_count = 1.0 / float(N * P)        # MSE over D output (N, 1, H, W)
    inv_l1_count = 1.0 / float(N * C * P)     # L1 over (N, C, H, W)

    big_spec = pl.BlockSpec((N, C, TP), lambda i: (0, 0, i))
    smem_spec = pl.BlockSpec(memory_space=pltpu.MemorySpace.SMEM)

    kernel = functools.partial(
        _generator_loss_kernel,
        C=C, inv_adv_count=inv_adv_count, inv_l1_count=inv_l1_count)

    out_shapes = (
        jax.ShapeDtypeStruct((num_tiles, 8, 128), jnp.float32),  # per-tile loss partials
        jax.ShapeDtypeStruct((N, C, P), jnp.float32),            # fake_A (N,C,P)
        jax.ShapeDtypeStruct((N, C, P), jnp.float32),            # fake_B (N,C,P)
    )
    out_specs = (
        pl.BlockSpec((1, 8, 128), lambda i: (i, 0, 0)),
        big_spec,
        big_spec,
    )

    partials, fake_A, fake_B = pl.pallas_call(
        kernel,
        grid=(num_tiles,),
        out_shape=out_shapes,
        in_specs=[big_spec, big_spec] + [smem_spec] * 8,
        out_specs=out_specs,
        compiler_params=pltpu.CompilerParams(
            dimension_semantics=("parallel",),
            vmem_limit_bytes=32 * 1024 * 1024),
    )(
        ra, rb,
        params["w_ab"], params["b_ab"],
        params["w_ba"], params["b_ba"],
        params["w_da"], params["b_da"],
        params["w_db"], params["b_db"],
    )

    loss_G = jnp.sum(partials[:, 0, 0])
    return loss_G, fake_A.reshape(N, C, H, W), fake_B.reshape(N, C, H, W)


def init_params(key, C):
    ks = jax.random.split(key, 8)
    return {
        "w_ab": 0.2 * jax.random.normal(ks[0], (C, C), jnp.float32),
        "b_ab": 0.1 * jax.random.normal(ks[1], (C,), jnp.float32),
        "w_ba": 0.2 * jax.random.normal(ks[2], (C, C), jnp.float32),
        "b_ba": 0.1 * jax.random.normal(ks[3], (C,), jnp.float32),
        "w_da": 0.2 * jax.random.normal(ks[4], (C,), jnp.float32),
        "b_da": 0.1 * jax.random.normal(ks[5], (1,), jnp.float32),
        "w_db": 0.2 * jax.random.normal(ks[6], (C,), jnp.float32),
        "b_db": 0.1 * jax.random.normal(ks[7], (1,), jnp.float32),
    }


def _reference(ra, rb, p):
    """Pure-JAX reference on the (N, C, P) layout."""
    def gen(x, w, b):
        return jnp.tanh(jnp.einsum("ok,nkp->nop", w, x) + b[None, :, None])

    def disc(x, w, b):
        return jnp.einsum("k,nkp->np", w, x) + b[0]

    fake_A = gen(rb, p["w_ba"], p["b_ba"])
    fake_B = gen(ra, p["w_ab"], p["b_ab"])
    adv = (jnp.mean((disc(fake_A, p["w_da"], p["b_da"]) - 1.0) ** 2)
           + jnp.mean((disc(fake_B, p["w_db"], p["b_db"]) - 1.0) ** 2))
    ident = (jnp.mean(jnp.abs(gen(ra, p["w_ba"], p["b_ba"]) - ra))
             + jnp.mean(jnp.abs(gen(rb, p["w_ab"], p["b_ab"]) - rb)))
    cyc = (jnp.mean(jnp.abs(gen(fake_B, p["w_ba"], p["b_ba"]) - ra))
           + jnp.mean(jnp.abs(gen(fake_A, p["w_ab"], p["b_ab"]) - rb)))
    loss = LAMBDA_IDENTITY * ident + LAMBDA_CYCLE * cyc + adv
    return loss, fake_A, fake_B


if __name__ == "__main__":
    key = jax.random.PRNGKey(0)
    k_params, k_a, k_b = jax.random.split(key, 3)

    N, C, H, W = 2, 4, 16, 16          # NCHW, matching PyTorch conv convention
    real_A = jax.random.normal(k_a, (N, C, H, W), jnp.float32)
    real_B = jax.random.normal(k_b, (N, C, H, W), jnp.float32)
    params = init_params(k_params, C)

    loss_G, fake_A, fake_B = jax.jit(generator_loss)(real_A, real_B, params)
    jax.block_until_ready((loss_G, fake_A, fake_B))

    # Pure-JAX reference check.
    ra = real_A.reshape(N, C, H * W).astype(jnp.float32)
    rb = real_B.reshape(N, C, H * W).astype(jnp.float32)
    ref_loss, ref_fa, ref_fb = _reference(ra, rb, params)

    assert fake_A.shape == (N, C, H, W) and fake_B.shape == (N, C, H, W)
    assert jnp.isfinite(loss_G)
    assert jnp.allclose(loss_G, ref_loss, rtol=1e-4, atol=1e-4)
    assert jnp.allclose(fake_A.reshape(N, C, H * W), ref_fa, rtol=1e-4, atol=1e-4)
    assert jnp.allclose(fake_B.reshape(N, C, H * W), ref_fb, rtol=1e-4, atol=1e-4)
    print("KERNEL_OK")
</pallas_src>

<mosaic_0001>
module attributes {stable_mosaic.version = 11 : i64} {
  func.func @_generator_loss_kernel(%arg0: i32, %arg1: memref<2x4x256xf32, #tpu.memory_space<vmem>>, %arg2: memref<2x4x256xf32, #tpu.memory_space<vmem>>, %arg3: memref<4x4xf32, #tpu.memory_space<smem>>, %arg4: memref<4xf32, #tpu.memory_space<smem>>, %arg5: memref<4x4xf32, #tpu.memory_space<smem>>, %arg6: memref<4xf32, #tpu.memory_space<smem>>, %arg7: memref<4xf32, #tpu.memory_space<smem>>, %arg8: memref<1xf32, #tpu.memory_space<smem>>, %arg9: memref<4xf32, #tpu.memory_space<smem>>, %arg10: memref<1xf32, #tpu.memory_space<smem>>, %arg11: memref<1x8x128xf32, #tpu.memory_space<vmem>>, %arg12: memref<2x4x256xf32, #tpu.memory_space<vmem>>, %arg13: memref<2x4x256xf32, #tpu.memory_space<vmem>>) attributes {dimension_semantics = [#tpu.dimension_semantics<parallel>], iteration_bounds = array<i64: 1>, scalar_prefetch = 0 : i64, scratch_operands = 0 : i64, tpu.core_type = #tpu.core_type<tc>, window_params = [{transform_indices = @transform_0, window_bounds = array<i64: 2, 4, 256>}, {transform_indices = @transform_1, window_bounds = array<i64: 2, 4, 256>}, {transform_indices = @transform_2, window_bounds = array<i64: 4, 4>}, {transform_indices = @transform_3, window_bounds = array<i64: 4>}, {transform_indices = @transform_4, window_bounds = array<i64: 4, 4>}, {transform_indices = @transform_5, window_bounds = array<i64: 4>}, {transform_indices = @transform_6, window_bounds = array<i64: 4>}, {transform_indices = @transform_7, window_bounds = array<i64: 1>}, {transform_indices = @transform_8, window_bounds = array<i64: 4>}, {transform_indices = @transform_9, window_bounds = array<i64: 1>}, {transform_indices = @transform_10, window_bounds = array<i64: 1, 8, 128>}, {transform_indices = @transform_11, window_bounds = array<i64: 2, 4, 256>}, {transform_indices = @transform_12, window_bounds = array<i64: 2, 4, 256>}]} {
    %c0 = arith.constant 0 : index
    %c0_0 = arith.constant 0 : index
    %c0_1 = arith.constant 0 : index
    %0 = vector.load %arg1[%c0, %c0_0, %c0_1] : memref<2x4x256xf32, #tpu.memory_space<vmem>>, vector<2x1x256xf32>
    %1 = vector.shape_cast %0 : vector<2x1x256xf32> to vector<2x256xf32>
    %c0_2 = arith.constant 0 : index
    %c1 = arith.constant 1 : index
    %c0_3 = arith.constant 0 : index
    %2 = vector.load %arg1[%c0_2, %c1, %c0_3] : memref<2x4x256xf32, #tpu.memory_space<vmem>>, vector<2x1x256xf32>
    %3 = vector.shape_cast %2 : vector<2x1x256xf32> to vector<2x256xf32>
    %c0_4 = arith.constant 0 : index
    %c2 = arith.constant 2 : index
    %c0_5 = arith.constant 0 : index
    %4 = vector.load %arg1[%c0_4, %c2, %c0_5] : memref<2x4x256xf32, #tpu.memory_space<vmem>>, vector<2x1x256xf32>
    %5 = vector.shape_cast %4 : vector<2x1x256xf32> to vector<2x256xf32>
    %c0_6 = arith.constant 0 : index
    %c3 = arith.constant 3 : index
    %c0_7 = arith.constant 0 : index
    %6 = vector.load %arg1[%c0_6, %c3, %c0_7] : memref<2x4x256xf32, #tpu.memory_space<vmem>>, vector<2x1x256xf32>
    %7 = vector.shape_cast %6 : vector<2x1x256xf32> to vector<2x256xf32>
    %c0_8 = arith.constant 0 : index
    %c0_9 = arith.constant 0 : index
    %c0_10 = arith.constant 0 : index
    %8 = vector.load %arg2[%c0_8, %c0_9, %c0_10] : memref<2x4x256xf32, #tpu.memory_space<vmem>>, vector<2x1x256xf32>
    %9 = vector.shape_cast %8 : vector<2x1x256xf32> to vector<2x256xf32>
    %c0_11 = arith.constant 0 : index
    %c1_12 = arith.constant 1 : index
    %c0_13 = arith.constant 0 : index
    %10 = vector.load %arg2[%c0_11, %c1_12, %c0_13] : memref<2x4x256xf32, #tpu.memory_space<vmem>>, vector<2x1x256xf32>
    %11 = vector.shape_cast %10 : vector<2x1x256xf32> to vector<2x256xf32>
    %c0_14 = arith.constant 0 : index
    %c2_15 = arith.constant 2 : index
    %c0_16 = arith.constant 0 : index
    %12 = vector.load %arg2[%c0_14, %c2_15, %c0_16] : memref<2x4x256xf32, #tpu.memory_space<vmem>>, vector<2x1x256xf32>
    %13 = vector.shape_cast %12 : vector<2x1x256xf32> to vector<2x256xf32>
    %c0_17 = arith.constant 0 : index
    %c3_18 = arith.constant 3 : index
    %c0_19 = arith.constant 0 : index
    %14 = vector.load %arg2[%c0_17, %c3_18, %c0_19] : memref<2x4x256xf32, #tpu.memory_space<vmem>>, vector<2x1x256xf32>
    %15 = vector.shape_cast %14 : vector<2x1x256xf32> to vector<2x256xf32>
    %c0_20 = arith.constant 0 : index
    %c0_21 = arith.constant 0 : index
    %16 = memref.load %arg5[%c0_20, %c0_21] : memref<4x4xf32, #tpu.memory_space<smem>>
    %17 = vector.broadcast %16 : f32 to vector<2x256xf32>
    %18 = arith.mulf %9, %17 : vector<2x256xf32>
    %c0_22 = arith.constant 0 : index
    %c1_23 = arith.constant 1 : index
    %19 = memref.load %arg5[%c0_22, %c1_23] : memref<4x4xf32, #tpu.memory_space<smem>>
    %20 = vector.broadcast %19 : f32 to vector<2x256xf32>
    %21 = arith.mulf %11, %20 : vector<2x256xf32>
    %22 = arith.addf %18, %21 : vector<2x256xf32>
    %c0_24 = arith.constant 0 : index
    %c2_25 = arith.constant 2 : index
    %23 = memref.load %arg5[%c0_24, %c2_25] : memref<4x4xf32, #tpu.memory_space<smem>>
    %24 = vector.broadcast %23 : f32 to vector<2x256xf32>
    %25 = arith.mulf %13, %24 : vector<2x256xf32>
    %26 = arith.addf %22, %25 : vector<2x256xf32>
    %c0_26 = arith.constant 0 : index
    %c3_27 = arith.constant 3 : index
    %27 = memref.load %arg5[%c0_26, %c3_27] : memref<4x4xf32, #tpu.memory_space<smem>>
    %28 = vector.broadcast %27 : f32 to vector<2x256xf32>
    %29 = arith.mulf %15, %28 : vector<2x256xf32>
    %30 = arith.addf %26, %29 : vector<2x256xf32>
    %c0_28 = arith.constant 0 : index
    %31 = memref.load %arg6[%c0_28] : memref<4xf32, #tpu.memory_space<smem>>
    %32 = vector.broadcast %31 : f32 to vector<2x256xf32>
    %33 = arith.addf %30, %32 : vector<2x256xf32>
    %34 = math.tanh %33 : vector<2x256xf32>
    %c1_29 = arith.constant 1 : index
    %c0_30 = arith.constant 0 : index
    %35 = memref.load %arg5[%c1_29, %c0_30] : memref<4x4xf32, #tpu.memory_space<smem>>
    %36 = vector.broadcast %35 : f32 to vector<2x256xf32>
    %37 = arith.mulf %9, %36 : vector<2x256xf32>
    %c1_31 = arith.constant 1 : index
    %c1_32 = arith.constant 1 : index
    %38 = memref.load %arg5[%c1_31, %c1_32] : memref<4x4xf32, #tpu.memory_space<smem>>
    %39 = vector.broadcast %38 : f32 to vector<2x256xf32>
    %40 = arith.mulf %11, %39 : vector<2x256xf32>
    %41 = arith.addf %37, %40 : vector<2x256xf32>
    %c1_33 = arith.constant 1 : index
    %c2_34 = arith.constant 2 : index
    %42 = memref.load %arg5[%c1_33, %c2_34] : memref<4x4xf32, #tpu.memory_space<smem>>
    %43 = vector.broadcast %42 : f32 to vector<2x256xf32>
    %44 = arith.mulf %13, %43 : vector<2x256xf32>
    %45 = arith.addf %41, %44 : vector<2x256xf32>
    %c1_35 = arith.constant 1 : index
    %c3_36 = arith.constant 3 : index
    %46 = memref.load %arg5[%c1_35, %c3_36] : memref<4x4xf32, #tpu.memory_space<smem>>
    %47 = vector.broadcast %46 : f32 to vector<2x256xf32>
    %48 = arith.mulf %15, %47 : vector<2x256xf32>
    %49 = arith.addf %45, %48 : vector<2x256xf32>
    %c1_37 = arith.constant 1 : index
    %50 = memref.load %arg6[%c1_37] : memref<4xf32, #tpu.memory_space<smem>>
    %51 = vector.broadcast %50 : f32 to vector<2x256xf32>
    %52 = arith.addf %49, %51 : vector<2x256xf32>
    %53 = math.tanh %52 : vector<2x256xf32>
    %c2_38 = arith.constant 2 : index
    %c0_39 = arith.constant 0 : index
    %54 = memref.load %arg5[%c2_38, %c0_39] : memref<4x4xf32, #tpu.memory_space<smem>>
    %55 = vector.broadcast %54 : f32 to vector<2x256xf32>
    %56 = arith.mulf %9, %55 : vector<2x256xf32>
    %c2_40 = arith.constant 2 : index
    %c1_41 = arith.constant 1 : index
    %57 = memref.load %arg5[%c2_40, %c1_41] : memref<4x4xf32, #tpu.memory_space<smem>>
    %58 = vector.broadcast %57 : f32 to vector<2x256xf32>
    %59 = arith.mulf %11, %58 : vector<2x256xf32>
    %60 = arith.addf %56, %59 : vector<2x256xf32>
    %c2_42 = arith.constant 2 : index
    %c2_43 = arith.constant 2 : index
    %61 = memref.load %arg5[%c2_42, %c2_43] : memref<4x4xf32, #tpu.memory_space<smem>>
    %62 = vector.broadcast %61 : f32 to vector<2x256xf32>
    %63 = arith.mulf %13, %62 : vector<2x256xf32>
    %64 = arith.addf %60, %63 : vector<2x256xf32>
    %c2_44 = arith.constant 2 : index
    %c3_45 = arith.constant 3 : index
    %65 = memref.load %arg5[%c2_44, %c3_45] : memref<4x4xf32, #tpu.memory_space<smem>>
    %66 = vector.broadcast %65 : f32 to vector<2x256xf32>
    %67 = arith.mulf %15, %66 : vector<2x256xf32>
    %68 = arith.addf %64, %67 : vector<2x256xf32>
    %c2_46 = arith.constant 2 : index
    %69 = memref.load %arg6[%c2_46] : memref<4xf32, #tpu.memory_space<smem>>
    %70 = vector.broadcast %69 : f32 to vector<2x256xf32>
    %71 = arith.addf %68, %70 : vector<2x256xf32>
    %72 = math.tanh %71 : vector<2x256xf32>
    %c3_47 = arith.constant 3 : index
    %c0_48 = arith.constant 0 : index
    %73 = memref.load %arg5[%c3_47, %c0_48] : memref<4x4xf32, #tpu.memory_space<smem>>
    %74 = vector.broadcast %73 : f32 to vector<2x256xf32>
    %75 = arith.mulf %9, %74 : vector<2x256xf32>
    %c3_49 = arith.constant 3 : index
    %c1_50 = arith.constant 1 : index
    %76 = memref.load %arg5[%c3_49, %c1_50] : memref<4x4xf32, #tpu.memory_space<smem>>
    %77 = vector.broadcast %76 : f32 to vector<2x256xf32>
    %78 = arith.mulf %11, %77 : vector<2x256xf32>
    %79 = arith.addf %75, %78 : vector<2x256xf32>
    %c3_51 = arith.constant 3 : index
    %c2_52 = arith.constant 2 : index
    %80 = memref.load %arg5[%c3_51, %c2_52] : memref<4x4xf32, #tpu.memory_space<smem>>
    %81 = vector.broadcast %80 : f32 to vector<2x256xf32>
    %82 = arith.mulf %13, %81 : vector<2x256xf32>
    %83 = arith.addf %79, %82 : vector<2x256xf32>
    %c3_53 = arith.constant 3 : index
    %c3_54 = arith.constant 3 : index
    %84 = memref.load %arg5[%c3_53, %c3_54] : memref<4x4xf32, #tpu.memory_space<smem>>
    %85 = vector.broadcast %84 : f32 to vector<2x256xf32>
    %86 = arith.mulf %15, %85 : vector<2x256xf32>
    %87 = arith.addf %83, %86 : vector<2x256xf32>
    %c3_55 = arith.constant 3 : index
    %88 = memref.load %arg6[%c3_55] : memref<4xf32, #tpu.memory_space<smem>>
    %89 = vector.broadcast %88 : f32 to vector<2x256xf32>
    %90 = arith.addf %87, %89 : vector<2x256xf32>
    %91 = math.tanh %90 : vector<2x256xf32>
    %c0_56 = arith.constant 0 : index
    %c0_57 = arith.constant 0 : index
    %92 = memref.load %arg3[%c0_56, %c0_57] : memref<4x4xf32, #tpu.memory_space<smem>>
    %93 = vector.broadcast %92 : f32 to vector<2x256xf32>
    %94 = arith.mulf %1, %93 : vector<2x256xf32>
    %c0_58 = arith.constant 0 : index
    %c1_59 = arith.constant 1 : index
    %95 = memref.load %arg3[%c0_58, %c1_59] : memref<4x4xf32, #tpu.memory_space<smem>>
    %96 = vector.broadcast %95 : f32 to vector<2x256xf32>
    %97 = arith.mulf %3, %96 : vector<2x256xf32>
    %98 = arith.addf %94, %97 : vector<2x256xf32>
    %c0_60 = arith.constant 0 : index
    %c2_61 = arith.constant 2 : index
    %99 = memref.load %arg3[%c0_60, %c2_61] : memref<4x4xf32, #tpu.memory_space<smem>>
    %100 = vector.broadcast %99 : f32 to vector<2x256xf32>
    %101 = arith.mulf %5, %100 : vector<2x256xf32>
    %102 = arith.addf %98, %101 : vector<2x256xf32>
    %c0_62 = arith.constant 0 : index
    %c3_63 = arith.constant 3 : index
    %103 = memref.load %arg3[%c0_62, %c3_63] : memref<4x4xf32, #tpu.memory_space<smem>>
    %104 = vector.broadcast %103 : f32 to vector<2x256xf32>
    %105 = arith.mulf %7, %104 : vector<2x256xf32>
    %106 = arith.addf %102, %105 : vector<2x256xf32>
    %c0_64 = arith.constant 0 : index
    %107 = memref.load %arg4[%c0_64] : memref<4xf32, #tpu.memory_space<smem>>
    %108 = vector.broadcast %107 : f32 to vector<2x256xf32>
    %109 = arith.addf %106, %108 : vector<2x256xf32>
    %110 = math.tanh %109 : vector<2x256xf32>
    %c1_65 = arith.constant 1 : index
    %c0_66 = arith.constant 0 : index
    %111 = memref.load %arg3[%c1_65, %c0_66] : memref<4x4xf32, #tpu.memory_space<smem>>
    %112 = vector.broadcast %111 : f32 to vector<2x256xf32>
    %113 = arith.mulf %1, %112 : vector<2x256xf32>
    %c1_67 = arith.constant 1 : index
    %c1_68 = arith.constant 1 : index
    %114 = memref.load %arg3[%c1_67, %c1_68] : memref<4x4xf32, #tpu.memory_space<smem>>
    %115 = vector.broadcast %114 : f32 to vector<2x256xf32>
    %116 = arith.mulf %3, %115 : vector<2x256xf32>
    %117 = arith.addf %113, %116 : vector<2x256xf32>
    %c1_69 = arith.constant 1 : index
    %c2_70 = arith.constant 2 : index
    %118 = memref.load %arg3[%c1_69, %c2_70] : memref<4x4xf32, #tpu.memory_space<smem>>
    %119 = vector.broadcast %118 : f32 to vector<2x256xf32>
    %120 = arith.mulf %5, %119 : vector<2x256xf32>
    %121 = arith.addf %117, %120 : vector<2x256xf32>
    %c1_71 = arith.constant 1 : index
    %c3_72 = arith.constant 3 : index
    %122 = memref.load %arg3[%c1_71, %c3_72] : memref<4x4xf32, #tpu.memory_space<smem>>
    %123 = vector.broadcast %122 : f32 to vector<2x256xf32>
    %124 = arith.mulf %7, %123 : vector<2x256xf32>
    %125 = arith.addf %121, %124 : vector<2x256xf32>
    %c1_73 = arith.constant 1 : index
    %126 = memref.load %arg4[%c1_73] : memref<4xf32, #tpu.memory_space<smem>>
    %127 = vector.broadcast %126 : f32 to vector<2x256xf32>
    %128 = arith.addf %125, %127 : vector<2x256xf32>
    %129 = math.tanh %128 : vector<2x256xf32>
    %c2_74 = arith.constant 2 : index
    %c0_75 = arith.constant 0 : index
    %130 = memref.load %arg3[%c2_74, %c0_75] : memref<4x4xf32, #tpu.memory_space<smem>>
    %131 = vector.broadcast %130 : f32 to vector<2x256xf32>
    %132 = arith.mulf %1, %131 : vector<2x256xf32>
    %c2_76 = arith.constant 2 : index
    %c1_77 = arith.constant 1 : index
    %133 = memref.load %arg3[%c2_76, %c1_77] : memref<4x4xf32, #tpu.memory_space<smem>>
    %134 = vector.broadcast %133 : f32 to vector<2x256xf32>
    %135 = arith.mulf %3, %134 : vector<2x256xf32>
    %136 = arith.addf %132, %135 : vector<2x256xf32>
    %c2_78 = arith.constant 2 : index
    %c2_79 = arith.constant 2 : index
    %137 = memref.load %arg3[%c2_78, %c2_79] : memref<4x4xf32, #tpu.memory_space<smem>>
    %138 = vector.broadcast %137 : f32 to vector<2x256xf32>
    %139 = arith.mulf %5, %138 : vector<2x256xf32>
    %140 = arith.addf %136, %139 : vector<2x256xf32>
    %c2_80 = arith.constant 2 : index
    %c3_81 = arith.constant 3 : index
    %141 = memref.load %arg3[%c2_80, %c3_81] : memref<4x4xf32, #tpu.memory_space<smem>>
    %142 = vector.broadcast %141 : f32 to vector<2x256xf32>
    %143 = arith.mulf %7, %142 : vector<2x256xf32>
    %144 = arith.addf %140, %143 : vector<2x256xf32>
    %c2_82 = arith.constant 2 : index
    %145 = memref.load %arg4[%c2_82] : memref<4xf32, #tpu.memory_space<smem>>
    %146 = vector.broadcast %145 : f32 to vector<2x256xf32>
    %147 = arith.addf %144, %146 : vector<2x256xf32>
    %148 = math.tanh %147 : vector<2x256xf32>
    %c3_83 = arith.constant 3 : index
    %c0_84 = arith.constant 0 : index
    %149 = memref.load %arg3[%c3_83, %c0_84] : memref<4x4xf32, #tpu.memory_space<smem>>
    %150 = vector.broadcast %149 : f32 to vector<2x256xf32>
    %151 = arith.mulf %1, %150 : vector<2x256xf32>
    %c3_85 = arith.constant 3 : index
    %c1_86 = arith.constant 1 : index
    %152 = memref.load %arg3[%c3_85, %c1_86] : memref<4x4xf32, #tpu.memory_space<smem>>
    %153 = vector.broadcast %152 : f32 to vector<2x256xf32>
    %154 = arith.mulf %3, %153 : vector<2x256xf32>
    %155 = arith.addf %151, %154 : vector<2x256xf32>
    %c3_87 = arith.constant 3 : index
    %c2_88 = arith.constant 2 : index
    %156 = memref.load %arg3[%c3_87, %c2_88] : memref<4x4xf32, #tpu.memory_space<smem>>
    %157 = vector.broadcast %156 : f32 to vector<2x256xf32>
    %158 = arith.mulf %5, %157 : vector<2x256xf32>
    %159 = arith.addf %155, %158 : vector<2x256xf32>
    %c3_89 = arith.constant 3 : index
    %c3_90 = arith.constant 3 : index
    %160 = memref.load %arg3[%c3_89, %c3_90] : memref<4x4xf32, #tpu.memory_space<smem>>
    %161 = vector.broadcast %160 : f32 to vector<2x256xf32>
    %162 = arith.mulf %7, %161 : vector<2x256xf32>
    %163 = arith.addf %159, %162 : vector<2x256xf32>
    %c3_91 = arith.constant 3 : index
    %164 = memref.load %arg4[%c3_91] : memref<4xf32, #tpu.memory_space<smem>>
    %165 = vector.broadcast %164 : f32 to vector<2x256xf32>
    %166 = arith.addf %163, %165 : vector<2x256xf32>
    %167 = math.tanh %166 : vector<2x256xf32>
    %c0_92 = arith.constant 0 : index
    %c0_93 = arith.constant 0 : index
    %c0_94 = arith.constant 0 : index
    %168 = vector.load %arg12[%c0_92, %c0_93, %c0_94] : memref<2x4x256xf32, #tpu.memory_space<vmem>>, vector<2x1x256xf32>
    %169 = vector.shape_cast %168 : vector<2x1x256xf32> to vector<2x256xf32>
    %170 = vector.shape_cast %34 : vector<2x256xf32> to vector<2x1x256xf32>
    tpu.vector_store %arg12[%c0_92, %c0_93, %c0_94], %170 {strides = array<i32>} : memref<2x4x256xf32, #tpu.memory_space<vmem>>, vector<2x1x256xf32>,
    %c0_95 = arith.constant 0 : index
    %c0_96 = arith.constant 0 : index
    %c0_97 = arith.constant 0 : index
    %171 = vector.load %arg13[%c0_95, %c0_96, %c0_97] : memref<2x4x256xf32, #tpu.memory_space<vmem>>, vector<2x1x256xf32>
    %172 = vector.shape_cast %171 : vector<2x1x256xf32> to vector<2x256xf32>
    %173 = vector.shape_cast %110 : vector<2x256xf32> to vector<2x1x256xf32>
    tpu.vector_store %arg13[%c0_95, %c0_96, %c0_97], %173 {strides = array<i32>} : memref<2x4x256xf32, #tpu.memory_space<vmem>>, vector<2x1x256xf32>,
    %c0_98 = arith.constant 0 : index
    %c1_99 = arith.constant 1 : index
    %c0_100 = arith.constant 0 : index
    %174 = vector.load %arg12[%c0_98, %c1_99, %c0_100] : memref<2x4x256xf32, #tpu.memory_space<vmem>>, vector<2x1x256xf32>
    %175 = vector.shape_cast %174 : vector<2x1x256xf32> to vector<2x256xf32>
    %176 = vector.shape_cast %53 : vector<2x256xf32> to vector<2x1x256xf32>
    tpu.vector_store %arg12[%c0_98, %c1_99, %c0_100], %176 {strides = array<i32>} : memref<2x4x256xf32, #tpu.memory_space<vmem>>, vector<2x1x256xf32>,
    %c0_101 = arith.constant 0 : index
    %c1_102 = arith.constant 1 : index
    %c0_103 = arith.constant 0 : index
    %177 = vector.load %arg13[%c0_101, %c1_102, %c0_103] : memref<2x4x256xf32, #tpu.memory_space<vmem>>, vector<2x1x256xf32>
    %178 = vector.shape_cast %177 : vector<2x1x256xf32> to vector<2x256xf32>
    %179 = vector.shape_cast %129 : vector<2x256xf32> to vector<2x1x256xf32>
    tpu.vector_store %arg13[%c0_101, %c1_102, %c0_103], %179 {strides = array<i32>} : memref<2x4x256xf32, #tpu.memory_space<vmem>>, vector<2x1x256xf32>,
    %c0_104 = arith.constant 0 : index
    %c2_105 = arith.constant 2 : index
    %c0_106 = arith.constant 0 : index
    %180 = vector.load %arg12[%c0_104, %c2_105, %c0_106] : memref<2x4x256xf32, #tpu.memory_space<vmem>>, vector<2x1x256xf32>
    %181 = vector.shape_cast %180 : vector<2x1x256xf32> to vector<2x256xf32>
    %182 = vector.shape_cast %72 : vector<2x256xf32> to vector<2x1x256xf32>
    tpu.vector_store %arg12[%c0_104, %c2_105, %c0_106], %182 {strides = array<i32>} : memref<2x4x256xf32, #tpu.memory_space<vmem>>, vector<2x1x256xf32>,
    %c0_107 = arith.constant 0 : index
    %c2_108 = arith.constant 2 : index
    %c0_109 = arith.constant 0 : index
    %183 = vector.load %arg13[%c0_107, %c2_108, %c0_109] : memref<2x4x256xf32, #tpu.memory_space<vmem>>, vector<2x1x256xf32>
    %184 = vector.shape_cast %183 : vector<2x1x256xf32> to vector<2x256xf32>
    %185 = vector.shape_cast %148 : vector<2x256xf32> to vector<2x1x256xf32>
    tpu.vector_store %arg13[%c0_107, %c2_108, %c0_109], %185 {strides = array<i32>} : memref<2x4x256xf32, #tpu.memory_space<vmem>>, vector<2x1x256xf32>,
    %c0_110 = arith.constant 0 : index
    %c3_111 = arith.constant 3 : index
    %c0_112 = arith.constant 0 : index
    %186 = vector.load %arg12[%c0_110, %c3_111, %c0_112] : memref<2x4x256xf32, #tpu.memory_space<vmem>>, vector<2x1x256xf32>
    %187 = vector.shape_cast %186 : vector<2x1x256xf32> to vector<2x256xf32>
    %188 = vector.shape_cast %91 : vector<2x256xf32> to vector<2x1x256xf32>
    tpu.vector_store %arg12[%c0_110, %c3_111, %c0_112], %188 {strides = array<i32>} : memref<2x4x256xf32, #tpu.memory_space<vmem>>, vector<2x1x256xf32>,
    %c0_113 = arith.constant 0 : index
    %c3_114 = arith.constant 3 : index
    %c0_115 = arith.constant 0 : index
    %189 = vector.load %arg13[%c0_113, %c3_114, %c0_115] : memref<2x4x256xf32, #tpu.memory_space<vmem>>, vector<2x1x256xf32>
    %190 = vector.shape_cast %189 : vector<2x1x256xf32> to vector<2x256xf32>
    %191 = vector.shape_cast %167 : vector<2x256xf32> to vector<2x1x256xf32>
    tpu.vector_store %arg13[%c0_113, %c3_114, %c0_115], %191 {strides = array<i32>} : memref<2x4x256xf32, #tpu.memory_space<vmem>>, vector<2x1x256xf32>,
    %c0_116 = arith.constant 0 : index
    %192 = memref.load %arg7[%c0_116] : memref<4xf32, #tpu.memory_space<smem>>
    %193 = vector.broadcast %192 : f32 to vector<2x256xf32>
    %194 = arith.mulf %34, %193 : vector<2x256xf32>
    %c1_117 = arith.constant 1 : index
    %195 = memref.load %arg7[%c1_117] : memref<4xf32, #tpu.memory_space<smem>>
    %196 = vector.broadcast %195 : f32 to vector<2x256xf32>
    %197 = arith.mulf %53, %196 : vector<2x256xf32>
    %198 = arith.addf %194, %197 : vector<2x256xf32>
    %c2_118 = arith.constant 2 : index
    %199 = memref.load %arg7[%c2_118] : memref<4xf32, #tpu.memory_space<smem>>
    %200 = vector.broadcast %199 : f32 to vector<2x256xf32>
    %201 = arith.mulf %72, %200 : vector<2x256xf32>
    %202 = arith.addf %198, %201 : vector<2x256xf32>
    %c3_119 = arith.constant 3 : index
    %203 = memref.load %arg7[%c3_119] : memref<4xf32, #tpu.memory_space<smem>>
    %204 = vector.broadcast %203 : f32 to vector<2x256xf32>
    %205 = arith.mulf %91, %204 : vector<2x256xf32>
    %206 = arith.addf %202, %205 : vector<2x256xf32>
    %c0_120 = arith.constant 0 : index
    %207 = memref.load %arg8[%c0_120] : memref<1xf32, #tpu.memory_space<smem>>
    %208 = vector.broadcast %207 : f32 to vector<2x256xf32>
    %209 = arith.addf %206, %208 : vector<2x256xf32>
    %c0_121 = arith.constant 0 : index
    %210 = memref.load %arg9[%c0_121] : memref<4xf32, #tpu.memory_space<smem>>
    %211 = vector.broadcast %210 : f32 to vector<2x256xf32>
    %212 = arith.mulf %110, %211 : vector<2x256xf32>
    %c1_122 = arith.constant 1 : index
    %213 = memref.load %arg9[%c1_122] : memref<4xf32, #tpu.memory_space<smem>>
    %214 = vector.broadcast %213 : f32 to vector<2x256xf32>
    %215 = arith.mulf %129, %214 : vector<2x256xf32>
    %216 = arith.addf %212, %215 : vector<2x256xf32>
    %c2_123 = arith.constant 2 : index
    %217 = memref.load %arg9[%c2_123] : memref<4xf32, #tpu.memory_space<smem>>
    %218 = vector.broadcast %217 : f32 to vector<2x256xf32>
    %219 = arith.mulf %148, %218 : vector<2x256xf32>
    %220 = arith.addf %216, %219 : vector<2x256xf32>
    %c3_124 = arith.constant 3 : index
    %221 = memref.load %arg9[%c3_124] : memref<4xf32, #tpu.memory_space<smem>>
    %222 = vector.broadcast %221 : f32 to vector<2x256xf32>
    %223 = arith.mulf %167, %222 : vector<2x256xf32>
    %224 = arith.addf %220, %223 : vector<2x256xf32>
    %c0_125 = arith.constant 0 : index
    %225 = memref.load %arg10[%c0_125] : memref<1xf32, #tpu.memory_space<smem>>
    %226 = vector.broadcast %225 : f32 to vector<2x256xf32>
    %227 = arith.addf %224, %226 : vector<2x256xf32>
    %cst = arith.constant 1.000000e+00 : f32
    %228 = vector.broadcast %cst : f32 to vector<2x256xf32>
    %229 = arith.subf %209, %228 : vector<2x256xf32>
    %230 = arith.mulf %229, %229 : vector<2x256xf32>
    %cst_126 = arith.constant 1.000000e+00 : f32
    %231 = vector.broadcast %cst_126 : f32 to vector<2x256xf32>
    %232 = arith.subf %227, %231 : vector<2x256xf32>
    %233 = arith.mulf %232, %232 : vector<2x256xf32>
    %234 = arith.addf %230, %233 : vector<2x256xf32>
    %c0_127 = arith.constant 0 : index
    %c0_128 = arith.constant 0 : index
    %235 = memref.load %arg5[%c0_127, %c0_128] : memref<4x4xf32, #tpu.memory_space<smem>>
    %236 = vector.broadcast %235 : f32 to vector<2x256xf32>
    %237 = arith.mulf %1, %236 : vector<2x256xf32>
    %c0_129 = arith.constant 0 : index
    %c1_130 = arith.constant 1 : index
    %238 = memref.load %arg5[%c0_129, %c1_130] : memref<4x4xf32, #tpu.memory_space<smem>>
    %239 = vector.broadcast %238 : f32 to vector<2x256xf32>
    %240 = arith.mulf %3, %239 : vector<2x256xf32>
    %241 = arith.addf %237, %240 : vector<2x256xf32>
    %c0_131 = arith.constant 0 : index
    %c2_132 = arith.constant 2 : index
    %242 = memref.load %arg5[%c0_131, %c2_132] : memref<4x4xf32, #tpu.memory_space<smem>>
    %243 = vector.broadcast %242 : f32 to vector<2x256xf32>
    %244 = arith.mulf %5, %243 : vector<2x256xf32>
    %245 = arith.addf %241, %244 : vector<2x256xf32>
    %c0_133 = arith.constant 0 : index
    %c3_134 = arith.constant 3 : index
    %246 = memref.load %arg5[%c0_133, %c3_134] : memref<4x4xf32, #tpu.memory_space<smem>>
    %247 = vector.broadcast %246 : f32 to vector<2x256xf32>
    %248 = arith.mulf %7, %247 : vector<2x256xf32>
    %249 = arith.addf %245, %248 : vector<2x256xf32>
    %c0_135 = arith.constant 0 : index
    %250 = memref.load %arg6[%c0_135] : memref<4xf32, #tpu.memory_space<smem>>
    %251 = vector.broadcast %250 : f32 to vector<2x256xf32>
    %252 = arith.addf %249, %251 : vector<2x256xf32>
    %253 = math.tanh %252 : vector<2x256xf32>
    %c1_136 = arith.constant 1 : index
    %c0_137 = arith.constant 0 : index
    %254 = memref.load %arg5[%c1_136, %c0_137] : memref<4x4xf32, #tpu.memory_space<smem>>
    %255 = vector.broadcast %254 : f32 to vector<2x256xf32>
    %256 = arith.mulf %1, %255 : vector<2x256xf32>
    %c1_138 = arith.constant 1 : index
    %c1_139 = arith.constant 1 : index
    %257 = memref.load %arg5[%c1_138, %c1_139] : memref<4x4xf32, #tpu.memory_space<smem>>
    %258 = vector.broadcast %257 : f32 to vector<2x256xf32>
    %259 = arith.mulf %3, %258 : vector<2x256xf32>
    %260 = arith.addf %256, %259 : vector<2x256xf32>
    %c1_140 = arith.constant 1 : index
    %c2_141 = arith.constant 2 : index
    %261 = memref.load %arg5[%c1_140, %c2_141] : memref<4x4xf32, #tpu.memory_space<smem>>
    %262 = vector.broadcast %261 : f32 to vector<2x256xf32>
    %263 = arith.mulf %5, %262 : vector<2x256xf32>
    %264 = arith.addf %260, %263 : vector<2x256xf32>
    %c1_142 = arith.constant 1 : index
    %c3_143 = arith.constant 3 : index
    %265 = memref.load %arg5[%c1_142, %c3_143] : memref<4x4xf32, #tpu.memory_space<smem>>
    %266 = vector.broadcast %265 : f32 to vector<2x256xf32>
    %267 = arith.mulf %7, %266 : vector<2x256xf32>
    %268 = arith.addf %264, %267 : vector<2x256xf32>
    %c1_144 = arith.constant 1 : index
    %269 = memref.load %arg6[%c1_144] : memref<4xf32, #tpu.memory_space<smem>>
    %270 = vector.broadcast %269 : f32 to vector<2x256xf32>
    %271 = arith.addf %268, %270 : vector<2x256xf32>
    %272 = math.tanh %271 : vector<2x256xf32>
    %c2_145 = arith.constant 2 : index
    %c0_146 = arith.constant 0 : index
    %273 = memref.load %arg5[%c2_145, %c0_146] : memref<4x4xf32, #tpu.memory_space<smem>>
    %274 = vector.broadcast %273 : f32 to vector<2x256xf32>
    %275 = arith.mulf %1, %274 : vector<2x256xf32>
    %c2_147 = arith.constant 2 : index
    %c1_148 = arith.constant 1 : index
    %276 = memref.load %arg5[%c2_147, %c1_148] : memref<4x4xf32, #tpu.memory_space<smem>>
    %277 = vector.broadcast %276 : f32 to vector<2x256xf32>
    %278 = arith.mulf %3, %277 : vector<2x256xf32>
    %279 = arith.addf %275, %278 : vector<2x256xf32>
    %c2_149 = arith.constant 2 : index
    %c2_150 = arith.constant 2 : index
    %280 = memref.load %arg5[%c2_149, %c2_150] : memref<4x4xf32, #tpu.memory_space<smem>>
    %281 = vector.broadcast %280 : f32 to vector<2x256xf32>
    %282 = arith.mulf %5, %281 : vector<2x256xf32>
    %283 = arith.addf %279, %282 : vector<2x256xf32>
    %c2_151 = arith.constant 2 : index
    %c3_152 = arith.constant 3 : index
    %284 = memref.load %arg5[%c2_151, %c3_152] : memref<4x4xf32, #tpu.memory_space<smem>>
    %285 = vector.broadcast %284 : f32 to vector<2x256xf32>
    %286 = arith.mulf %7, %285 : vector<2x256xf32>
    %287 = arith.addf %283, %286 : vector<2x256xf32>
    %c2_153 = arith.constant 2 : index
    %288 = memref.load %arg6[%c2_153] : memref<4xf32, #tpu.memory_space<smem>>
    %289 = vector.broadcast %288 : f32 to vector<2x256xf32>
    %290 = arith.addf %287, %289 : vector<2x256xf32>
    %291 = math.tanh %290 : vector<2x256xf32>
    %c3_154 = arith.constant 3 : index
    %c0_155 = arith.constant 0 : index
    %292 = memref.load %arg5[%c3_154, %c0_155] : memref<4x4xf32, #tpu.memory_space<smem>>
    %293 = vector.broadcast %292 : f32 to vector<2x256xf32>
    %294 = arith.mulf %1, %293 : vector<2x256xf32>
    %c3_156 = arith.constant 3 : index
    %c1_157 = arith.constant 1 : index
    %295 = memref.load %arg5[%c3_156, %c1_157] : memref<4x4xf32, #tpu.memory_space<smem>>
    %296 = vector.broadcast %295 : f32 to vector<2x256xf32>
    %297 = arith.mulf %3, %296 : vector<2x256xf32>
    %298 = arith.addf %294, %297 : vector<2x256xf32>
    %c3_158 = arith.constant 3 : index
    %c2_159 = arith.constant 2 : index
    %299 = memref.load %arg5[%c3_158, %c2_159] : memref<4x4xf32, #tpu.memory_space<smem>>
    %300 = vector.broadcast %299 : f32 to vector<2x256xf32>
    %301 = arith.mulf %5, %300 : vector<2x256xf32>
    %302 = arith.addf %298, %301 : vector<2x256xf32>
    %c3_160 = arith.constant 3 : index
    %c3_161 = arith.constant 3 : index
    %303 = memref.load %arg5[%c3_160, %c3_161] : memref<4x4xf32, #tpu.memory_space<smem>>
    %304 = vector.broadcast %303 : f32 to vector<2x256xf32>
    %305 = arith.mulf %7, %304 : vector<2x256xf32>
    %306 = arith.addf %302, %305 : vector<2x256xf32>
    %c3_162 = arith.constant 3 : index
    %307 = memref.load %arg6[%c3_162] : memref<4xf32, #tpu.memory_space<smem>>
    %308 = vector.broadcast %307 : f32 to vector<2x256xf32>
    %309 = arith.addf %306, %308 : vector<2x256xf32>
    %310 = math.tanh %309 : vector<2x256xf32>
    %c0_163 = arith.constant 0 : index
    %c0_164 = arith.constant 0 : index
    %311 = memref.load %arg3[%c0_163, %c0_164] : memref<4x4xf32, #tpu.memory_space<smem>>
    %312 = vector.broadcast %311 : f32 to vector<2x256xf32>
    %313 = arith.mulf %9, %312 : vector<2x256xf32>
    %c0_165 = arith.constant 0 : index
    %c1_166 = arith.constant 1 : index
    %314 = memref.load %arg3[%c0_165, %c1_166] : memref<4x4xf32, #tpu.memory_space<smem>>
    %315 = vector.broadcast %314 : f32 to vector<2x256xf32>
    %316 = arith.mulf %11, %315 : vector<2x256xf32>
    %317 = arith.addf %313, %316 : vector<2x256xf32>
    %c0_167 = arith.constant 0 : index
    %c2_168 = arith.constant 2 : index
    %318 = memref.load %arg3[%c0_167, %c2_168] : memref<4x4xf32, #tpu.memory_space<smem>>
    %319 = vector.broadcast %318 : f32 to vector<2x256xf32>
    %320 = arith.mulf %13, %319 : vector<2x256xf32>
    %321 = arith.addf %317, %320 : vector<2x256xf32>
    %c0_169 = arith.constant 0 : index
    %c3_170 = arith.constant 3 : index
    %322 = memref.load %arg3[%c0_169, %c3_170] : memref<4x4xf32, #tpu.memory_space<smem>>
    %323 = vector.broadcast %322 : f32 to vector<2x256xf32>
    %324 = arith.mulf %15, %323 : vector<2x256xf32>
    %325 = arith.addf %321, %324 : vector<2x256xf32>
    %c0_171 = arith.constant 0 : index
    %326 = memref.load %arg4[%c0_171] : memref<4xf32, #tpu.memory_space<smem>>
    %327 = vector.broadcast %326 : f32 to vector<2x256xf32>
    %328 = arith.addf %325, %327 : vector<2x256xf32>
    %329 = math.tanh %328 : vector<2x256xf32>
    %c1_172 = arith.constant 1 : index
    %c0_173 = arith.constant 0 : index
    %330 = memref.load %arg3[%c1_172, %c0_173] : memref<4x4xf32, #tpu.memory_space<smem>>
    %331 = vector.broadcast %330 : f32 to vector<2x256xf32>
    %332 = arith.mulf %9, %331 : vector<2x256xf32>
    %c1_174 = arith.constant 1 : index
    %c1_175 = arith.constant 1 : index
    %333 = memref.load %arg3[%c1_174, %c1_175] : memref<4x4xf32, #tpu.memory_space<smem>>
    %334 = vector.broadcast %333 : f32 to vector<2x256xf32>
    %335 = arith.mulf %11, %334 : vector<2x256xf32>
    %336 = arith.addf %332, %335 : vector<2x256xf32>
    %c1_176 = arith.constant 1 : index
    %c2_177 = arith.constant 2 : index
    %337 = memref.load %arg3[%c1_176, %c2_177] : memref<4x4xf32, #tpu.memory_space<smem>>
    %338 = vector.broadcast %337 : f32 to vector<2x256xf32>
    %339 = arith.mulf %13, %338 : vector<2x256xf32>
    %340 = arith.addf %336, %339 : vector<2x256xf32>
    %c1_178 = arith.constant 1 : index
    %c3_179 = arith.constant 3 : index
    %341 = memref.load %arg3[%c1_178, %c3_179] : memref<4x4xf32, #tpu.memory_space<smem>>
    %342 = vector.broadcast %341 : f32 to vector<2x256xf32>
    %343 = arith.mulf %15, %342 : vector<2x256xf32>
    %344 = arith.addf %340, %343 : vector<2x256xf32>
    %c1_180 = arith.constant 1 : index
    %345 = memref.load %arg4[%c1_180] : memref<4xf32, #tpu.memory_space<smem>>
    %346 = vector.broadcast %345 : f32 to vector<2x256xf32>
    %347 = arith.addf %344, %346 : vector<2x256xf32>
    %348 = math.tanh %347 : vector<2x256xf32>
    %c2_181 = arith.constant 2 : index
    %c0_182 = arith.constant 0 : index
    %349 = memref.load %arg3[%c2_181, %c0_182] : memref<4x4xf32, #tpu.memory_space<smem>>
    %350 = vector.broadcast %349 : f32 to vector<2x256xf32>
    %351 = arith.mulf %9, %350 : vector<2x256xf32>
    %c2_183 = arith.constant 2 : index
    %c1_184 = arith.constant 1 : index
    %352 = memref.load %arg3[%c2_183, %c1_184] : memref<4x4xf32, #tpu.memory_space<smem>>
    %353 = vector.broadcast %352 : f32 to vector<2x256xf32>
    %354 = arith.mulf %11, %353 : vector<2x256xf32>
    %355 = arith.addf %351, %354 : vector<2x256xf32>
    %c2_185 = arith.constant 2 : index
    %c2_186 = arith.constant 2 : index
    %356 = memref.load %arg3[%c2_185, %c2_186] : memref<4x4xf32, #tpu.memory_space<smem>>
    %357 = vector.broadcast %356 : f32 to vector<2x256xf32>
    %358 = arith.mulf %13, %357 : vector<2x256xf32>
    %359 = arith.addf %355, %358 : vector<2x256xf32>
    %c2_187 = arith.constant 2 : index
    %c3_188 = arith.constant 3 : index
    %360 = memref.load %arg3[%c2_187, %c3_188] : memref<4x4xf32, #tpu.memory_space<smem>>
    %361 = vector.broadcast %360 : f32 to vector<2x256xf32>
    %362 = arith.mulf %15, %361 : vector<2x256xf32>
    %363 = arith.addf %359, %362 : vector<2x256xf32>
    %c2_189 = arith.constant 2 : index
    %364 = memref.load %arg4[%c2_189] : memref<4xf32, #tpu.memory_space<smem>>
    %365 = vector.broadcast %364 : f32 to vector<2x256xf32>
    %366 = arith.addf %363, %365 : vector<2x256xf32>
    %367 = math.tanh %366 : vector<2x256xf32>
    %c3_190 = arith.constant 3 : index
    %c0_191 = arith.constant 0 : index
    %368 = memref.load %arg3[%c3_190, %c0_191] : memref<4x4xf32, #tpu.memory_space<smem>>
    %369 = vector.broadcast %368 : f32 to vector<2x256xf32>
    %370 = arith.mulf %9, %369 : vector<2x256xf32>
    %c3_192 = arith.constant 3 : index
    %c1_193 = arith.constant 1 : index
    %371 = memref.load %arg3[%c3_192, %c1_193] : memref<4x4xf32, #tpu.memory_space<smem>>
    %372 = vector.broadcast %371 : f32 to vector<2x256xf32>
    %373 = arith.mulf %11, %372 : vector<2x256xf32>
    %374 = arith.addf %370, %373 : vector<2x256xf32>
    %c3_194 = arith.constant 3 : index
    %c2_195 = arith.constant 2 : index
    %375 = memref.load %arg3[%c3_194, %c2_195] : memref<4x4xf32, #tpu.memory_space<smem>>
    %376 = vector.broadcast %375 : f32 to vector<2x256xf32>
    %377 = arith.mulf %13, %376 : vector<2x256xf32>
    %378 = arith.addf %374, %377 : vector<2x256xf32>
    %c3_196 = arith.constant 3 : index
    %c3_197 = arith.constant 3 : index
    %379 = memref.load %arg3[%c3_196, %c3_197] : memref<4x4xf32, #tpu.memory_space<smem>>
    %380 = vector.broadcast %379 : f32 to vector<2x256xf32>
    %381 = arith.mulf %15, %380 : vector<2x256xf32>
    %382 = arith.addf %378, %381 : vector<2x256xf32>
    %c3_198 = arith.constant 3 : index
    %383 = memref.load %arg4[%c3_198] : memref<4xf32, #tpu.memory_space<smem>>
    %384 = vector.broadcast %383 : f32 to vector<2x256xf32>
    %385 = arith.addf %382, %384 : vector<2x256xf32>
    %386 = math.tanh %385 : vector<2x256xf32>
    %387 = arith.subf %253, %1 : vector<2x256xf32>
    %388 = math.absf %387 : vector<2x256xf32>
    %389 = arith.subf %272, %3 : vector<2x256xf32>
    %390 = math.absf %389 : vector<2x256xf32>
    %391 = arith.addf %388, %390 : vector<2x256xf32>
    %392 = arith.subf %291, %5 : vector<2x256xf32>
    %393 = math.absf %392 : vector<2x256xf32>
    %394 = arith.addf %391, %393 : vector<2x256xf32>
    %395 = arith.subf %310, %7 : vector<2x256xf32>
    %396 = math.absf %395 : vector<2x256xf32>
    %397 = arith.addf %394, %396 : vector<2x256xf32>
    %398 = arith.subf %329, %9 : vector<2x256xf32>
    %399 = math.absf %398 : vector<2x256xf32>
    %400 = arith.subf %348, %11 : vector<2x256xf32>
    %401 = math.absf %400 : vector<2x256xf32>
    %402 = arith.addf %399, %401 : vector<2x256xf32>
    %403 = arith.subf %367, %13 : vector<2x256xf32>
    %404 = math.absf %403 : vector<2x256xf32>
    %405 = arith.addf %402, %404 : vector<2x256xf32>
    %406 = arith.subf %386, %15 : vector<2x256xf32>
    %407 = math.absf %406 : vector<2x256xf32>
    %408 = arith.addf %405, %407 : vector<2x256xf32>
    %409 = arith.addf %397, %408 : vector<2x256xf32>
    %c0_199 = arith.constant 0 : index
    %c0_200 = arith.constant 0 : index
    %410 = memref.load %arg5[%c0_199, %c0_200] : memref<4x4xf32, #tpu.memory_space<smem>>
    %411 = vector.broadcast %410 : f32 to vector<2x256xf32>
    %412 = arith.mulf %110, %411 : vector<2x256xf32>
    %c0_201 = arith.constant 0 : index
    %c1_202 = arith.constant 1 : index
    %413 = memref.load %arg5[%c0_201, %c1_202] : memref<4x4xf32, #tpu.memory_space<smem>>
    %414 = vector.broadcast %413 : f32 to vector<2x256xf32>
    %415 = arith.mulf %129, %414 : vector<2x256xf32>
    %416 = arith.addf %412, %415 : vector<2x256xf32>
    %c0_203 = arith.constant 0 : index
    %c2_204 = arith.constant 2 : index
    %417 = memref.load %arg5[%c0_203, %c2_204] : memref<4x4xf32, #tpu.memory_space<smem>>
    %418 = vector.broadcast %417 : f32 to vector<2x256xf32>
    %419 = arith.mulf %148, %418 : vector<2x256xf32>
    %420 = arith.addf %416, %419 : vector<2x256xf32>
    %c0_205 = arith.constant 0 : index
    %c3_206 = arith.constant 3 : index
    %421 = memref.load %arg5[%c0_205, %c3_206] : memref<4x4xf32, #tpu.memory_space<smem>>
    %422 = vector.broadcast %421 : f32 to vector<2x256xf32>
    %423 = arith.mulf %167, %422 : vector<2x256xf32>
    %424 = arith.addf %420, %423 : vector<2x256xf32>
    %c0_207 = arith.constant 0 : index
    %425 = memref.load %arg6[%c0_207] : memref<4xf32, #tpu.memory_space<smem>>
    %426 = vector.broadcast %425 : f32 to vector<2x256xf32>
    %427 = arith.addf %424, %426 : vector<2x256xf32>
    %428 = math.tanh %427 : vector<2x256xf32>
    %c1_208 = arith.constant 1 : index
    %c0_209 = arith.constant 0 : index
    %429 = memref.load %arg5[%c1_208, %c0_209] : memref<4x4xf32, #tpu.memory_space<smem>>
    %430 = vector.broadcast %429 : f32 to vector<2x256xf32>
    %431 = arith.mulf %110, %430 : vector<2x256xf32>
    %c1_210 = arith.constant 1 : index
    %c1_211 = arith.constant 1 : index
    %432 = memref.load %arg5[%c1_210, %c1_211] : memref<4x4xf32, #tpu.memory_space<smem>>
    %433 = vector.broadcast %432 : f32 to vector<2x256xf32>
    %434 = arith.mulf %129, %433 : vector<2x256xf32>
    %435 = arith.addf %431, %434 : vector<2x256xf32>
    %c1_212 = arith.constant 1 : index
    %c2_213 = arith.constant 2 : index
    %436 = memref.load %arg5[%c1_212, %c2_213] : memref<4x4xf32, #tpu.memory_space<smem>>
    %437 = vector.broadcast %436 : f32 to vector<2x256xf32>
    %438 = arith.mulf %148, %437 : vector<2x256xf32>
    %439 = arith.addf %435, %438 : vector<2x256xf32>
    %c1_214 = arith.constant 1 : index
    %c3_215 = arith.constant 3 : index
    %440 = memref.load %arg5[%c1_214, %c3_215] : memref<4x4xf32, #tpu.memory_space<smem>>
    %441 = vector.broadcast %440 : f32 to vector<2x256xf32>
    %442 = arith.mulf %167, %441 : vector<2x256xf32>
    %443 = arith.addf %439, %442 : vector<2x256xf32>
    %c1_216 = arith.constant 1 : index
    %444 = memref.load %arg6[%c1_216] : memref<4xf32, #tpu.memory_space<smem>>
    %445 = vector.broadcast %444 : f32 to vector<2x256xf32>
    %446 = arith.addf %443, %445 : vector<2x256xf32>
    %447 = math.tanh %446 : vector<2x256xf32>
    %c2_217 = arith.constant 2 : index
    %c0_218 = arith.constant 0 : index
    %448 = memref.load %arg5[%c2_217, %c0_218] : memref<4x4xf32, #tpu.memory_space<smem>>
    %449 = vector.broadcast %448 : f32 to vector<2x256xf32>
    %450 = arith.mulf %110, %449 : vector<2x256xf32>
    %c2_219 = arith.constant 2 : index
    %c1_220 = arith.constant 1 : index
    %451 = memref.load %arg5[%c2_219, %c1_220] : memref<4x4xf32, #tpu.memory_space<smem>>
    %452 = vector.broadcast %451 : f32 to vector<2x256xf32>
    %453 = arith.mulf %129, %452 : vector<2x256xf32>
    %454 = arith.addf %450, %453 : vector<2x256xf32>
    %c2_221 = arith.constant 2 : index
    %c2_222 = arith.constant 2 : index
    %455 = memref.load %arg5[%c2_221, %c2_222] : memref<4x4xf32, #tpu.memory_space<smem>>
    %456 = vector.broadcast %455 : f32 to vector<2x256xf32>
    %457 = arith.mulf %148, %456 : vector<2x256xf32>
    %458 = arith.addf %454, %457 : vector<2x256xf32>
    %c2_223 = arith.constant 2 : index
    %c3_224 = arith.constant 3 : index
    %459 = memref.load %arg5[%c2_223, %c3_224] : memref<4x4xf32, #tpu.memory_space<smem>>
    %460 = vector.broadcast %459 : f32 to vector<2x256xf32>
    %461 = arith.mulf %167, %460 : vector<2x256xf32>
    %462 = arith.addf %458, %461 : vector<2x256xf32>
    %c2_225 = arith.constant 2 : index
    %463 = memref.load %arg6[%c2_225] : memref<4xf32, #tpu.memory_space<smem>>
    %464 = vector.broadcast %463 : f32 to vector<2x256xf32>
    %465 = arith.addf %462, %464 : vector<2x256xf32>
    %466 = math.tanh %465 : vector<2x256xf32>
    %c3_226 = arith.constant 3 : index
    %c0_227 = arith.constant 0 : index
    %467 = memref.load %arg5[%c3_226, %c0_227] : memref<4x4xf32, #tpu.memory_space<smem>>
    %468 = vector.broadcast %467 : f32 to vector<2x256xf32>
    %469 = arith.mulf %110, %468 : vector<2x256xf32>
    %c3_228 = arith.constant 3 : index
    %c1_229 = arith.constant 1 : index
    %470 = memref.load %arg5[%c3_228, %c1_229] : memref<4x4xf32, #tpu.memory_space<smem>>
    %471 = vector.broadcast %470 : f32 to vector<2x256xf32>
    %472 = arith.mulf %129, %471 : vector<2x256xf32>
    %473 = arith.addf %469, %472 : vector<2x256xf32>
    %c3_230 = arith.constant 3 : index
    %c2_231 = arith.constant 2 : index
    %474 = memref.load %arg5[%c3_230, %c2_231] : memref<4x4xf32, #tpu.memory_space<smem>>
    %475 = vector.broadcast %474 : f32 to vector<2x256xf32>
    %476 = arith.mulf %148, %475 : vector<2x256xf32>
    %477 = arith.addf %473, %476 : vector<2x256xf32>
    %c3_232 = arith.constant 3 : index
    %c3_233 = arith.constant 3 : index
    %478 = memref.load %arg5[%c3_232, %c3_233] : memref<4x4xf32, #tpu.memory_space<smem>>
    %479 = vector.broadcast %478 : f32 to vector<2x256xf32>
    %480 = arith.mulf %167, %479 : vector<2x256xf32>
    %481 = arith.addf %477, %480 : vector<2x256xf32>
    %c3_234 = arith.constant 3 : index
    %482 = memref.load %arg6[%c3_234] : memref<4xf32, #tpu.memory_space<smem>>
    %483 = vector.broadcast %482 : f32 to vector<2x256xf32>
    %484 = arith.addf %481, %483 : vector<2x256xf32>
    %485 = math.tanh %484 : vector<2x256xf32>
    %c0_235 = arith.constant 0 : index
    %c0_236 = arith.constant 0 : index
    %486 = memref.load %arg3[%c0_235, %c0_236] : memref<4x4xf32, #tpu.memory_space<smem>>
    %487 = vector.broadcast %486 : f32 to vector<2x256xf32>
    %488 = arith.mulf %34, %487 : vector<2x256xf32>
    %c0_237 = arith.constant 0 : index
    %c1_238 = arith.constant 1 : index
    %489 = memref.load %arg3[%c0_237, %c1_238] : memref<4x4xf32, #tpu.memory_space<smem>>
    %490 = vector.broadcast %489 : f32 to vector<2x256xf32>
    %491 = arith.mulf %53, %490 : vector<2x256xf32>
    %492 = arith.addf %488, %491 : vector<2x256xf32>
    %c0_239 = arith.constant 0 : index
    %c2_240 = arith.constant 2 : index
    %493 = memref.load %arg3[%c0_239, %c2_240] : memref<4x4xf32, #tpu.memory_space<smem>>
    %494 = vector.broadcast %493 : f32 to vector<2x256xf32>
    %495 = arith.mulf %72, %494 : vector<2x256xf32>
    %496 = arith.addf %492, %495 : vector<2x256xf32>
    %c0_241 = arith.constant 0 : index
    %c3_242 = arith.constant 3 : index
    %497 = memref.load %arg3[%c0_241, %c3_242] : memref<4x4xf32, #tpu.memory_space<smem>>
    %498 = vector.broadcast %497 : f32 to vector<2x256xf32>
    %499 = arith.mulf %91, %498 : vector<2x256xf32>
    %500 = arith.addf %496, %499 : vector<2x256xf32>
    %c0_243 = arith.constant 0 : index
    %501 = memref.load %arg4[%c0_243] : memref<4xf32, #tpu.memory_space<smem>>
    %502 = vector.broadcast %501 : f32 to vector<2x256xf32>
    %503 = arith.addf %500, %502 : vector<2x256xf32>
    %504 = math.tanh %503 : vector<2x256xf32>
    %c1_244 = arith.constant 1 : index
    %c0_245 = arith.constant 0 : index
    %505 = memref.load %arg3[%c1_244, %c0_245] : memref<4x4xf32, #tpu.memory_space<smem>>
    %506 = vector.broadcast %505 : f32 to vector<2x256xf32>
    %507 = arith.mulf %34, %506 : vector<2x256xf32>
    %c1_246 = arith.constant 1 : index
    %c1_247 = arith.constant 1 : index
    %508 = memref.load %arg3[%c1_246, %c1_247] : memref<4x4xf32, #tpu.memory_space<smem>>
    %509 = vector.broadcast %508 : f32 to vector<2x256xf32>
    %510 = arith.mulf %53, %509 : vector<2x256xf32>
    %511 = arith.addf %507, %510 : vector<2x256xf32>
    %c1_248 = arith.constant 1 : index
    %c2_249 = arith.constant 2 : index
    %512 = memref.load %arg3[%c1_248, %c2_249] : memref<4x4xf32, #tpu.memory_space<smem>>
    %513 = vector.broadcast %512 : f32 to vector<2x256xf32>
    %514 = arith.mulf %72, %513 : vector<2x256xf32>
    %515 = arith.addf %511, %514 : vector<2x256xf32>
    %c1_250 = arith.constant 1 : index
    %c3_251 = arith.constant 3 : index
    %516 = memref.load %arg3[%c1_250, %c3_251] : memref<4x4xf32, #tpu.memory_space<smem>>
    %517 = vector.broadcast %516 : f32 to vector<2x256xf32>
    %518 = arith.mulf %91, %517 : vector<2x256xf32>
    %519 = arith.addf %515, %518 : vector<2x256xf32>
    %c1_252 = arith.constant 1 : index
    %520 = memref.load %arg4[%c1_252] : memref<4xf32, #tpu.memory_space<smem>>
    %521 = vector.broadcast %520 : f32 to vector<2x256xf32>
    %522 = arith.addf %519, %521 : vector<2x256xf32>
    %523 = math.tanh %522 : vector<2x256xf32>
    %c2_253 = arith.constant 2 : index
    %c0_254 = arith.constant 0 : index
    %524 = memref.load %arg3[%c2_253, %c0_254] : memref<4x4xf32, #tpu.memory_space<smem>>
    %525 = vector.broadcast %524 : f32 to vector<2x256xf32>
    %526 = arith.mulf %34, %525 : vector<2x256xf32>
    %c2_255 = arith.constant 2 : index
    %c1_256 = arith.constant 1 : index
    %527 = memref.load %arg3[%c2_255, %c1_256] : memref<4x4xf32, #tpu.memory_space<smem>>
    %528 = vector.broadcast %527 : f32 to vector<2x256xf32>
    %529 = arith.mulf %53, %528 : vector<2x256xf32>
    %530 = arith.addf %526, %529 : vector<2x256xf32>
    %c2_257 = arith.constant 2 : index
    %c2_258 = arith.constant 2 : index
    %531 = memref.load %arg3[%c2_257, %c2_258] : memref<4x4xf32, #tpu.memory_space<smem>>
    %532 = vector.broadcast %531 : f32 to vector<2x256xf32>
    %533 = arith.mulf %72, %532 : vector<2x256xf32>
    %534 = arith.addf %530, %533 : vector<2x256xf32>
    %c2_259 = arith.constant 2 : index
    %c3_260 = arith.constant 3 : index
    %535 = memref.load %arg3[%c2_259, %c3_260] : memref<4x4xf32, #tpu.memory_space<smem>>
    %536 = vector.broadcast %535 : f32 to vector<2x256xf32>
    %537 = arith.mulf %91, %536 : vector<2x256xf32>
    %538 = arith.addf %534, %537 : vector<2x256xf32>
    %c2_261 = arith.constant 2 : index
    %539 = memref.load %arg4[%c2_261] : memref<4xf32, #tpu.memory_space<smem>>
    %540 = vector.broadcast %539 : f32 to vector<2x256xf32>
    %541 = arith.addf %538, %540 : vector<2x256xf32>
    %542 = math.tanh %541 : vector<2x256xf32>
    %c3_262 = arith.constant 3 : index
    %c0_263 = arith.constant 0 : index
    %543 = memref.load %arg3[%c3_262, %c0_263] : memref<4x4xf32, #tpu.memory_space<smem>>
    %544 = vector.broadcast %543 : f32 to vector<2x256xf32>
    %545 = arith.mulf %34, %544 : vector<2x256xf32>
    %c3_264 = arith.constant 3 : index
    %c1_265 = arith.constant 1 : index
    %546 = memref.load %arg3[%c3_264, %c1_265] : memref<4x4xf32, #tpu.memory_space<smem>>
    %547 = vector.broadcast %546 : f32 to vector<2x256xf32>
    %548 = arith.mulf %53, %547 : vector<2x256xf32>
    %549 = arith.addf %545, %548 : vector<2x256xf32>
    %c3_266 = arith.constant 3 : index
    %c2_267 = arith.constant 2 : index
    %550 = memref.load %arg3[%c3_266, %c2_267] : memref<4x4xf32, #tpu.memory_space<smem>>
    %551 = vector.broadcast %550 : f32 to vector<2x256xf32>
    %552 = arith.mulf %72, %551 : vector<2x256xf32>
    %553 = arith.addf %549, %552 : vector<2x256xf32>
    %c3_268 = arith.constant 3 : index
    %c3_269 = arith.constant 3 : index
    %554 = memref.load %arg3[%c3_268, %c3_269] : memref<4x4xf32, #tpu.memory_space<smem>>
    %555 = vector.broadcast %554 : f32 to vector<2x256xf32>
    %556 = arith.mulf %91, %555 : vector<2x256xf32>
    %557 = arith.addf %553, %556 : vector<2x256xf32>
    %c3_270 = arith.constant 3 : index
    %558 = memref.load %arg4[%c3_270] : memref<4xf32, #tpu.memory_space<smem>>
    %559 = vector.broadcast %558 : f32 to vector<2x256xf32>
    %560 = arith.addf %557, %559 : vector<2x256xf32>
    %561 = math.tanh %560 : vector<2x256xf32>
    %562 = arith.subf %428, %1 : vector<2x256xf32>
    %563 = math.absf %562 : vector<2x256xf32>
    %564 = arith.subf %447, %3 : vector<2x256xf32>
    %565 = math.absf %564 : vector<2x256xf32>
    %566 = arith.addf %563, %565 : vector<2x256xf32>
    %567 = arith.subf %466, %5 : vector<2x256xf32>
    %568 = math.absf %567 : vector<2x256xf32>
    %569 = arith.addf %566, %568 : vector<2x256xf32>
    %570 = arith.subf %485, %7 : vector<2x256xf32>
    %571 = math.absf %570 : vector<2x256xf32>
    %572 = arith.addf %569, %571 : vector<2x256xf32>
    %573 = arith.subf %504, %9 : vector<2x256xf32>
    %574 = math.absf %573 : vector<2x256xf32>
    %575 = arith.subf %523, %11 : vector<2x256xf32>
    %576 = math.absf %575 : vector<2x256xf32>
    %577 = arith.addf %574, %576 : vector<2x256xf32>
    %578 = arith.subf %542, %13 : vector<2x256xf32>
    %579 = math.absf %578 : vector<2x256xf32>
    %580 = arith.addf %577, %579 : vector<2x256xf32>
    %581 = arith.subf %561, %15 : vector<2x256xf32>
    %582 = math.absf %581 : vector<2x256xf32>
    %583 = arith.addf %580, %582 : vector<2x256xf32>
    %584 = arith.addf %572, %583 : vector<2x256xf32>
    %cst_271 = arith.constant 0.001953125 : f32
    %585 = vector.broadcast %cst_271 : f32 to vector<2x256xf32>
    %586 = arith.mulf %234, %585 : vector<2x256xf32>
    %cst_272 = arith.constant 4.88281257E-5 : f32
    %587 = vector.broadcast %cst_272 : f32 to vector<2x256xf32>
    %588 = arith.mulf %409, %587 : vector<2x256xf32>
    %589 = arith.addf %586, %588 : vector<2x256xf32>
    %cst_273 = arith.constant 0.0048828125 : f32
    %590 = vector.broadcast %cst_273 : f32 to vector<2x256xf32>
    %591 = arith.mulf %584, %590 : vector<2x256xf32>
    %592 = arith.addf %589, %591 : vector<2x256xf32>
    %593 = vector.shape_cast %592 : vector<2x256xf32> to vector<1x2x256xf32>
    %cst_274 = arith.constant dense<0.000000e+00> : vector<1xf32>
    %594 = vector.multi_reduction <add>, %593, %cst_274 [1, 2] : vector<1x2x256xf32> to vector<1xf32>
    %595 = vector.shape_cast %594 : vector<1xf32> to vector<1x1x1xf32>
    %596 = vector.extract %595[0, 0, 0] : f32 from vector<1x1x1xf32>
    %597 = vector.broadcast %596 : f32 to vector<1x8x128xf32>
    %c0_275 = arith.constant 0 : index
    %c0_276 = arith.constant 0 : index
    %c0_277 = arith.constant 0 : index
    %598 = vector.load %arg11[%c0_275, %c0_276, %c0_277] : memref<1x8x128xf32, #tpu.memory_space<vmem>>, vector<1x8x128xf32>
    tpu.vector_store %arg11[%c0_275, %c0_276, %c0_277], %597 {strides = array<i32>} : memref<1x8x128xf32, #tpu.memory_space<vmem>>, vector<1x8x128xf32>,
    return
  }
  func.func @transform_0(%arg0: i32) -> (i32, i32, i32) {
    %c0_i32 = arith.constant 0 : i32
    %c0_i32_0 = arith.constant 0 : i32
    %c0_i32_1 = arith.constant 0 : i32
    return %c0_i32, %c0_i32_0, %arg0 : i32, i32, i32
  }
  func.func @transform_1(%arg0: i32) -> (i32, i32, i32) {
    %c0_i32 = arith.constant 0 : i32
    %c0_i32_0 = arith.constant 0 : i32
    %c0_i32_1 = arith.constant 0 : i32
    return %c0_i32, %c0_i32_0, %arg0 : i32, i32, i32
  }
  func.func @transform_2(%arg0: i32) -> (i32, i32) {
    %c0_i32 = arith.constant 0 : i32
    %c0_i32_0 = arith.constant 0 : i32
    %c0_i32_1 = arith.constant 0 : i32
    return %c0_i32, %c0_i32_0 : i32, i32
  }
  func.func @transform_3(%arg0: i32) -> i32 {
    %c0_i32 = arith.constant 0 : i32
    %c0_i32_0 = arith.constant 0 : i32
    return %c0_i32 : i32
  }
  func.func @transform_4(%arg0: i32) -> (i32, i32) {
    %c0_i32 = arith.constant 0 : i32
    %c0_i32_0 = arith.constant 0 : i32
    %c0_i32_1 = arith.constant 0 : i32
    return %c0_i32, %c0_i32_0 : i32, i32
  }
  func.func @transform_5(%arg0: i32) -> i32 {
    %c0_i32 = arith.constant 0 : i32
    %c0_i32_0 = arith.constant 0 : i32
    return %c0_i32 : i32
  }
  func.func @transform_6(%arg0: i32) -> i32 {
    %c0_i32 = arith.constant 0 : i32
    %c0_i32_0 = arith.constant 0 : i32
    return %c0_i32 : i32
  }
  func.func @transform_7(%arg0: i32) -> i32 {
    %c0_i32 = arith.constant 0 : i32
    %c0_i32_0 = arith.constant 0 : i32
    return %c0_i32 : i32
  }
  func.func @transform_8(%arg0: i32) -> i32 {
    %c0_i32 = arith.constant 0 : i32
    %c0_i32_0 = arith.constant 0 : i32
    return %c0_i32 : i32
  }
  func.func @transform_9(%arg0: i32) -> i32 {
    %c0_i32 = arith.constant 0 : i32
    %c0_i32_0 = arith.constant 0 : i32
    return %c0_i32 : i32
  }
  func.func @transform_10(%arg0: i32) -> (i32, i32, i32) {
    %c0_i32 = arith.constant 0 : i32
    %c0_i32_0 = arith.constant 0 : i32
    %c0_i32_1 = arith.constant 0 : i32
    return %arg0, %c0_i32, %c0_i32_0 : i32, i32, i32
  }
  func.func @transform_11(%arg0: i32) -> (i32, i32, i32) {
    %c0_i32 = arith.constant 0 : i32
    %c0_i32_0 = arith.constant 0 : i32
    %c0_i32_1 = arith.constant 0 : i32
    return %c0_i32, %c0_i32_0, %arg0 : i32, i32, i32
  }
  func.func @transform_12(%arg0: i32) -> (i32, i32, i32) {
    %c0_i32 = arith.constant 0 : i32
    %c0_i32_0 = arith.constant 0 : i32
    %c0_i32_1 = arith.constant 0 : i32
    return %c0_i32, %c0_i32_0, %arg0 : i32, i32, i32
  }
}

</mosaic_0001>

<bundles_post_ra>
// kernel: generator_loss.1
= control target key start
LH: loop header
LB: loop body
LE: loop exit
PB: predicated region body
PF: predicated region fallthrough
CT: control target
= control target key end

     0   :  { %20 = vsyncpa [#allocation5], 0  ;;  %s2418_s0 = inlined_call_operand.vmem [shape: f32[2,4,256], index: 0, kind: input, shape index: {}]   ;;  %s2419_s1 = inlined_call_operand.vmem [shape: f32[2,4,256], index: 1, kind: input, shape index: {}]   ;;  %s2420_s2 = inlined_call_operand.vmem [shape: f32[4,4], index: 2, kind: input, shape index: {}]   ;;  %s2421_s3 = inlined_call_operand.vmem [shape: f32[4], index: 3, kind: input, shape index: {}]   ;;  %s2422_s4 = inlined_call_operand.vmem [shape: f32[4,4], index: 4, kind: input, shape index: {}]   ;;  %s2423_s5 = inlined_call_operand.vmem [shape: f32[4], index: 5, kind: input, shape index: {}]   ;;  %s2424_s6 = inlined_call_operand.vmem [shape: f32[4], index: 6, kind: input, shape index: {}]   ;;  %s2425_s7 = inlined_call_operand.<no memory space> [shape: f32[1], index: 7, kind: input, shape index: {}]   ;;  %s2426_s8 = inlined_call_operand.vmem [shape: f32[4], index: 8, kind: input, shape index: {}]   ;;  %s2427_s9 = inlined_call_operand.<no memory space> [shape: f32[1], index: 9, kind: input, shape index: {}]   ;;  %s2428_s10 = inlined_call_operand.vmem [shape: f32[1,8,128], index: 10, kind: output, shape index: {0}]   ;;  %s2429_s11 = inlined_call_operand.vmem [shape: f32[2,4,256], index: 11, kind: output, shape index: {1}]   ;;  %s2430_s12 = inlined_call_operand.vmem [shape: f32[2,4,256], index: 12, kind: output, shape index: {2}]  }
   0x1   :  { %21 = vsyncpa [#allocation7], 0 }
   0x2   :  { %22 = vsyncpa [#allocation10], 0  ;;  %s44_s23 = sshll.u32 %s2421_s3, 4  ;;  %s45_s23 = int_to_ptr.vmem [resolvable:$true] %s44_s23 }
   0x3   :  { %23 = vsyncpa [#allocation13], 0  ;;  %s64_s26 = sshll.u32 %s2423_s5, 4  ;;  %s1220_s27 = scalar_lea.vmem %s45_s23, 16  ;;  %s65_s26 = int_to_ptr.vmem [resolvable:$true] %s64_s26 }
   0x4   :  { %p1221_p0 = scmp.ne.s32.totalorder %s45_s23, %s1220_s27  ;;  %p1225_p1 = scmp.lt.s32.totalorder %s45_s23, %s45_s23 }
   0x5   :  { %p1226_p2 = scmp.lt.s32.totalorder %s1220_s27, %s1220_s27 }
   0x7   :  { %p1227_p3 = por %p1226_p2, %p1225_p1 }
   0x9   :  { %p1228_p4 = pnand %p1227_p3, %p1221_p0 }
   0xb   :  { %1231 = shalt.err (!%p1228_p4)
}
   0xc   :  { %s1300_s28 = smov [#allocation6]   ;;  %s1232_s29 = scalar_lea.vmem %s65_s26, 16 }
   0xd   :  { %47 = dma.vmem_to_smem %s45_s23, 16, %s1300_s28, [#allocation7]  }
   0xe   :  { %p1233_p5 = scmp.ne.s32.totalorder %s65_s26, %s1232_s29  ;;  %p1237_p6 = scmp.lt.s32.totalorder %s65_s26, %s65_s26 }
   0xf   :  { %p1238_p7 = scmp.lt.s32.totalorder %s1232_s29, %s1232_s29 }
  0x11   :  { %p1239_p8 = por %p1238_p7, %p1237_p6 }
  0x13   :  { %p1240_p9 = pnand %p1239_p8, %p1233_p5 }
  0x15   :  { %1243 = shalt.err (!%p1240_p9)
}
  0x16   :  { %s1301_s3 = smov [#allocation9]   ;;  %s34_s13 = sshll.u32 %s2420_s2, 4  ;;  %s35_s13 = int_to_ptr.vmem [resolvable:$true] %s34_s13 }
  0x17   :  { %67 = dma.vmem_to_smem %s65_s26, 16, %s1301_s3, [#allocation10]  }
  0x18   :  { %s54_s16 = sshll.u32 %s2422_s4, 4  ;;  %s1244_s17 = scalar_lea.vmem %s35_s13, 64  ;;  %s55_s16 = int_to_ptr.vmem [resolvable:$true] %s54_s16 }
  0x19   :  { %p1245_p10 = scmp.ne.s32.totalorder %s35_s13, %s1244_s17  ;;  %p1249_p11 = scmp.lt.s32.totalorder %s35_s13, %s35_s13 }
  0x1a   :  { %p1250_p12 = scmp.lt.s32.totalorder %s1244_s17, %s1244_s17 }
  0x1c   :  { %p1251_p13 = por %p1250_p12, %p1249_p11 }
  0x1e   :  { %p1252_p0 = pnand %p1251_p13, %p1245_p10 }
  0x20   :  { %1255 = shalt.err (!%p1252_p0)
}
  0x21   :  { %s1302_s18 = smov [#allocation4]   ;;  %s1256_s19 = scalar_lea.vmem %s55_s16, 64 }
  0x22   :  { %37 = dma.vmem_to_smem %s35_s13, 64, %s1302_s18, [#allocation5]  }
  0x23   :  { %p1257_p1 = scmp.ne.s32.totalorder %s55_s16, %s1256_s19  ;;  %p1261_p2 = scmp.lt.s32.totalorder %s55_s16, %s55_s16 }
  0x24   :  { %p1262_p3 = scmp.lt.s32.totalorder %s1256_s19, %s1256_s19 }
  0x26   :  { %p1263_p4 = por %p1262_p3, %p1261_p2 }
  0x28   :  { %p1264_p5 = pnand %p1263_p4, %p1257_p1 }
  0x2a   :  { %1267 = shalt.err (!%p1264_p5)
}
  0x2b   :  { %s1303_s2 = smov [#allocation8]   ;;  %s74_s21 = sshll.u32 %s2424_s6, 4  ;;  %s75_s21 = int_to_ptr.vmem [resolvable:$true] %s74_s21 }
  0x2c   :  { %57 = dma.vmem_to_smem %s55_s16, 64, %s1303_s2, [#allocation7]  }
  0x2d   :  { %s86_s24 = sshll.u32 %s2426_s8, 4  ;;  %s1268_s25 = scalar_lea.vmem %s75_s21, 16  ;;  %s87_s24 = int_to_ptr.vmem [resolvable:$true] %s86_s24 }
  0x2e   :  { %p1269_p6 = scmp.ne.s32.totalorder %s75_s21, %s1268_s25  ;;  %p1273_p7 = scmp.lt.s32.totalorder %s75_s21, %s75_s21 }
  0x2f   :  { %p1274_p8 = scmp.lt.s32.totalorder %s1268_s25, %s1268_s25 }
  0x31   :  { %p1275_p9 = por %p1274_p8, %p1273_p7 }
  0x33   :  { %p1276_p10 = pnand %p1275_p9, %p1269_p6 }
  0x35   :  { %1279 = shalt.err (!%p1276_p10)
}
  0x36   :  { %s1304_s26 = smov [#allocation11]   ;;  %s1280_s27 = scalar_lea.vmem %s87_s24, 16 }
  0x37   :  { %77 = dma.vmem_to_smem %s75_s21, 16, %s1304_s26, [#allocation10]  }
  0x38   :  { %p1281_p11 = scmp.ne.s32.totalorder %s87_s24, %s1280_s27  ;;  %p1285_p12 = scmp.lt.s32.totalorder %s87_s24, %s87_s24 }
  0x39   :  { %p1286_p13 = scmp.lt.s32.totalorder %s1280_s27, %s1280_s27 }
  0x3b   :  { %p1287_p0 = por %p1286_p13, %p1285_p12 }
  0x3d   :  { %p1288_p1 = pnand %p1287_p0, %p1281_p11 }
  0x3f   :  { %1291 = shalt.err (!%p1288_p1)
}
  0x40   :  { %s1305_s6 = smov [#allocation12]  }
  0x41   :  { %89 = dma.vmem_to_smem %s87_s24, 16, %s1305_s6, [#allocation13]  }
  0x42   :  { %1292 = dma.done.wait [#allocation5], 64  }
  0x43   :  { %1293 = vsyncadd [#allocation5], 4294967232 }
  0x44   :  { %1294 = dma.done.wait [#allocation7], 80  }
  0x45   :  { %1295 = vsyncadd [#allocation7], 4294967216 }
  0x46   :  { %1296 = dma.done.wait [#allocation10], 32  }
  0x47   :  { %1297 = vsyncadd [#allocation10], 4294967264 }
  0x48   :  { %1298 = dma.done.wait [#allocation13], 16  }
  0x49   :  { %1299 = vsyncadd [#allocation13], 4294967280 }
  0x4a   :  { %110 = sfence }
  0x4b   :  { %s141_s8 = sld [smem:[#allocation8]]  ;;  %v1393_v0 = vld [vmem:[%s2419_s1] ss:$4 sm:$0x3]  ;;  %v2431_v30 = vlaneseq  ;;  %vm958_vm1 = vcmask 1041408  }
  0x4c   :  { %s1003_s28 = sld [smem:[#allocation8 + $0x1]]  ;;  %v1398_v1 = vld [vmem:[%s2419_s1 + $0x8] ss:$4 sm:$0x3] }
  0x4d   :  { %s1004_s13 = sld [smem:[#allocation8 + $0x2]]  ;;  %v1403_v2 = vld [vmem:[%s2419_s1 + $0x1] ss:$4 sm:$0x3]  ;;  %vm1530_vm0 = vcmp.lt.s32.totalorder %v2431_v30, 256 }
  0x4e   :  { %v1408_v3 = vld [vmem:[%s2419_s1 + $0x9] ss:$4 sm:$0x3]  ;;  %s1005_s18 = sld [smem:[#allocation8 + $0x3]] }
  0x4f   :  { %v1413_v4 = vld [vmem:[%s2419_s1 + $0x2] ss:$4 sm:$0x3]  ;;  %s1415_s4 = sld [smem:[#allocation9]] }
  0x50   :  { %2530 = vst [vmem:[#allocation18_spill] sm:$0xff] %v1413_v4  ;;  %v1420_v5 = vld [vmem:[%s2419_s1 + $0xa] ss:$4 sm:$0x3]  ;;  %s1006_s22 = sld [smem:[#allocation8 + $0x80]] }
  0x51   :  { %2531 = vst [vmem:[#allocation19_spill] sm:$0xff] %v1420_v5  ;;  %v1425_v6 = vld [vmem:[%s2419_s1 + $0x3] ss:$4 sm:$0x3]  ;;  %v1427_v7 = vstv %s141_s8  ;;  %s1007_s25 = sld [smem:[#allocation8 + $0x81]] }
  0x52   :  { %2532 = vst [vmem:[#allocation20_spill] sm:$0xff] %v1425_v6  ;;  %2533 = vst [vmem:[#allocation21_spill] sm:$0xff] %v1427_v7  ;;  %v1432_v8 = vld [vmem:[%s2419_s1 + $0xb] ss:$4 sm:$0x3]  ;;  %v143_v9 = vmul.f32 %v1427_v7, %v1393_v0  ;;  %v144_v10 = vmul.f32 %v1398_v1, %v1427_v7  ;;  %v1438_v11 = vstv %s1003_s28  ;;  %s1008_s6 = sld [smem:[#allocation8 + $0x82]] }
  0x53   :  { %2534 = vst [vmem:[#allocation22_spill] sm:$0xff] %v1432_v8  ;;  %2535 = vst [vmem:[#allocation23_spill] sm:$0xff] %v1438_v11  ;;  %v147_v12 = vmul.f32 %v1403_v2, %v1438_v11  ;;  %v148_v13 = vmul.f32 %v1408_v3, %v1438_v11  ;;  %v1444_v14 = vstv %s1004_s13  ;;  %s1009_s8 = sld [smem:[#allocation8 + $0x83]] }
  0x54   :  { %2536 = vst [vmem:[#allocation24_spill] sm:$0xff] %v1444_v14  ;;  %v153_v15 = vmul.f32 %v1413_v4, %v1444_v14  ;;  %v154_v16 = vmul.f32 %v1420_v5, %v1444_v14  ;;  %v1450_v17 = vstv %s1005_s18  ;;  %s1010_s28 = sld [smem:[#allocation9 + $0x1]] }
  0x55   :  { %2537 = vst [vmem:[#allocation25_spill] sm:$0xff] %v1450_v17  ;;  %v149_v18 = vadd.f32 %v147_v12, %v143_v9  ;;  %v150_v19 = vadd.f32 %v148_v13, %v144_v10  ;;  %v159_v20 = vmul.f32 %v1425_v6, %v1450_v17  ;;  %v160_v21 = vmul.f32 %v1432_v8, %v1450_v17  ;;  %s1011_s29 = sld [smem:[#allocation8 + $0x100]] }
  0x56   :  { %v1456_v22 = vstv %s1006_s22  ;;  %s1012_s3 = sld [smem:[#allocation8 + $0x101]]  ;;  %v1465_v27 = vstv %s1415_s4 }
  0x57   :  { %2538 = vst [vmem:[#allocation26_spill] sm:$0xff] %v1456_v22  ;;  %v155_v23 = vadd.f32 %v153_v15, %v149_v18  ;;  %v156_v24 = vadd.f32 %v154_v16, %v150_v19  ;;  %v171_v25 = vmul.f32 %v1456_v22, %v1393_v0  ;;  %v172_v26 = vmul.f32 %v1398_v1, %v1456_v22  ;;  %s1462_s5 = sld [smem:[#allocation8 + $0x102]] }
  0x58   :  { %v1467_v28 = vstv %s1007_s25  ;;  %v1469_v29 = vstv %s1008_s6  ;;  %s1471_s30 = sld [smem:[#allocation8 + $0x103]] }
  0x59   :  { %2539 = vst [vmem:[#allocation27_spill] sm:$0xff] %v1467_v28  ;;  %v161_v31 = vadd.f32 %v159_v20, %v155_v23  ;;  %v162_v32 = vadd.f32 %v160_v21, %v156_v24  ;;  %v175_v33 = vmul.f32 %v1403_v2, %v1467_v28  ;;  %v176_v34 = vmul.f32 %v1408_v3, %v1467_v28  ;;  %s1477_s13 = sld [smem:[#allocation9 + $0x2]]  ;;  %v1560_v21 = vld [vmem:[%s2418_s0] ss:$4 sm:$0x3] }
  0x5a   :  { %v181_v35 = vmul.f32 %v1413_v4, %v1469_v29  ;;  %v182_v36 = vmul.f32 %v1420_v5, %v1469_v29  ;;  %v1483_v37 = vstv %s1009_s8  ;;  %v1485_v38 = vstv %s1010_s28  ;;  %s1487_s14 = sld [smem:[#allocation8 + $0x180]]  ;;  %v1565_v23 = vld [vmem:[%s2418_s0 + $0x8] ss:$4 sm:$0x3] }
  0x5b   :  { %v165_v39 = vadd.f32 %v1465_v27, %v161_v31  ;;  %v166_v40 = vadd.f32 %v1465_v27, %v162_v32  ;;  %v177_v41 = vadd.f32 %v175_v33, %v171_v25  ;;  %v178_v42 = vadd.f32 %v176_v34, %v172_v26  ;;  %s1491_s15 = sld [smem:[#allocation8 + $0x181]]  ;;  %v1574_v31 = vld [vmem:[%s2418_s0 + $0x1] ss:$4 sm:$0x3] }
  0x5c   :  { %v187_v43 = vmul.f32 %v1425_v6, %v1483_v37  ;;  %v188_v44 = vmul.f32 %v1432_v8, %v1483_v37  ;;  %v1497_v45 = vstv %s1011_s29  ;;  %v1499_v46 = vstv %s1012_s3  ;;  %s1501_s16 = sld [smem:[#allocation8 + $0x182]] }
  0x5d   :  { %1108 = vtanh.f32 %v165_v39  ;;  %v183_v47 = vadd.f32 %v181_v35, %v177_v41  ;;  %v184_v48 = vadd.f32 %v182_v36, %v178_v42  ;;  %v199_v49 = vmul.f32 %v1497_v45, %v1393_v0  ;;  %s1505_s17 = sld [smem:[#allocation8 + $0x183]]  ;;  %v1592_v36 = vld [vmem:[%s2418_s0 + $0x9] ss:$4 sm:$0x3] }
  0x5e   :  { %1110 = vtanh.f32 %v166_v40  ;;  %v200_v50 = vmul.f32 %v1398_v1, %v1497_v45  ;;  %v203_v51 = vmul.f32 %v1403_v2, %v1499_v46  ;;  %v204_v52 = vmul.f32 %v1408_v3, %v1499_v46  ;;  %s1513_s18 = sld [smem:[#allocation9 + $0x3]] }
  0x5f   :  { %v189_v53 = vadd.f32 %v187_v43, %v183_v47  ;;  %v190_v54 = vadd.f32 %v188_v44, %v184_v48  ;;  %v1516_v55 = vstv %s1462_s5  ;;  %v1519_v56 = vstv %s1471_s30  ;;  %s1521_s19 = sld [smem:[#allocation4]]  ;;  %v1603_v43 = vld [vmem:[%s2418_s0 + $0x2] ss:$4 sm:$0x3] }
  0x60   :  { %2540 = vst [vmem:[#allocation28_spill] sm:$0xff] %v1516_v55  ;;  %2541 = vst [vmem:[#allocation29_spill] sm:$0xff] %v1519_v56  ;;  %v205_v57 = vadd.f32 %v203_v51, %v199_v49  ;;  %v206_v58 = vadd.f32 %v204_v52, %v200_v50  ;;  %v209_v59 = vmul.f32 %v1413_v4, %v1516_v55  ;;  %s1527_s2 = sld [smem:[#allocation4 + $0x1]]  ;;  %v1541_v15 = vstv %s1477_s13  ;;  %v1616_v50 = vld [vmem:[%s2418_s0 + $0xa] ss:$4 sm:$0x3] }
  0x61   :  { %v210_v60 = vmul.f32 %v1420_v5, %v1516_v55  ;;  %v193_v62 = vadd.f32 %v1485_v38, %v189_v53  ;;  %v194_v63 = vadd.f32 %v1485_v38, %v190_v54  ;;  %v215_v9 = vmul.f32 %v1425_v6, %v1519_v56  ;;  %2544 = vst [vmem:[#allocation30_spill] sm:$0xff] %v1541_v15  ;;  %s1546_s4 = sld [smem:[#allocation4 + $0x2]]  ;;  %v1629_v54 = vld [vmem:[%s2418_s0 + $0x3] ss:$4 sm:$0x3] }
  0x62   :  { %v216_v10 = vmul.f32 %v1432_v8, %v1519_v56  ;;  %v211_v12 = vadd.f32 %v209_v59, %v205_v57  ;;  %v1544_v16 = vstv %s1487_s14  ;;  %v1553_v20 = vstv %s1491_s15  ;;  %s1555_s20 = sld [smem:[#allocation4 + $0x3]] }
  0x63   :  { %v212_v13 = vadd.f32 %v210_v60, %v206_v58  ;;  %1112 = vtanh.f32 %v193_v62  ;;  %v227_v18 = vmul.f32 %v1544_v16, %v1393_v0  ;;  %v228_v19 = vmul.f32 %v1398_v1, %v1544_v16  ;;  %s1569_s25 = sld [smem:[#allocation6]]  ;;  %v1642_v62 = vld [vmem:[%s2418_s0 + $0xb] ss:$4 sm:$0x3] }
  0x64   :  { %1114 = vtanh.f32 %v194_v63  ;;  %v217_v24 = vadd.f32 %v215_v9, %v211_v12  ;;  %v231_v26 = vmul.f32 %v1403_v2, %v1553_v20  ;;  %v232_v32 = vmul.f32 %v1408_v3, %v1553_v20  ;;  %s1587_s6 = sld [smem:[#allocation4 + $0x80]] }
  0x65   :  { %v218_v25 = vadd.f32 %v216_v10, %v212_v13  ;;  %v1579_v33 = vstv %s1501_s16  ;;  %v1582_v34 = vstv %s1505_s17  ;;  %v1585_v35 = vstv %s1513_s18  ;;  %s1598_s29 = sld [smem:[#allocation4 + $0x81]] }
  0x66   :  { %2545 = vst [vmem:[#allocation31_spill] sm:$0xff] %v1582_v34  ;;  %2546 = vst [vmem:[#allocation32_spill] sm:$0xff] %v1585_v35  ;;  %v221_v39 = vadd.f32 %v1541_v15, %v217_v24  ;;  %v233_v41 = vadd.f32 %v231_v26, %v227_v18  ;;  %v237_v42 = vmul.f32 %v1413_v4, %v1579_v33  ;;  %s1611_s30 = sld [smem:[#allocation4 + $0x82]]  ;;  %v1619_v52 = vstv %s1521_s19 }
  0x67   :  { %v222_v40 = vadd.f32 %v1541_v15, %v218_v25  ;;  %v234_v44 = vadd.f32 %v232_v32, %v228_v19  ;;  %v238_v47 = vmul.f32 %v1420_v5, %v1579_v33  ;;  %v243_v48 = vmul.f32 %v1425_v6, %v1582_v34  ;;  %2547 = vst [vmem:[#allocation33_spill] sm:$0xff] %v1619_v52  ;;  %s1624_s15 = sld [smem:[#allocation4 + $0x83]] }
  0x68   :  { %v244_v49 = vmul.f32 %v1432_v8, %v1582_v34  ;;  %1116 = vtanh.f32 %v221_v39  ;;  %v239_v51 = vadd.f32 %v237_v42, %v233_v41  ;;  %v1622_v53 = vstv %s1527_s2  ;;  %s1635_s18 = sld [smem:[#allocation6 + $0x1]] }
  0x69   :  { %2548 = vst [vmem:[#allocation34_spill] sm:$0xff] %v1622_v53  ;;  %1118 = vtanh.f32 %v222_v40  ;;  %v240_v57 = vadd.f32 %v238_v47, %v234_v44  ;;  %v255_v58 = vmul.f32 %v1619_v52, %v1560_v21  ;;  %v256_v59 = vmul.f32 %v1565_v23, %v1619_v52  ;;  %s1651_s21 = sld [smem:[#allocation4 + $0x100]] }
  0x6a   :  { %v1637_v60 = vpop.eup %1108  ;;  %v245_v63 = vadd.f32 %v243_v48, %v239_v51  ;;  %v259_v9 = vmul.f32 %v1574_v31, %v1622_v53  ;;  %v260_v10 = vmul.f32 %v1592_v36, %v1622_v53  ;;  %v1649_v12 = vstv %s1546_s4  ;;  %s1662_s22 = sld [smem:[#allocation4 + $0x101]] }
  0x6b   :  { %2549 = vst [vmem:[#allocation35_spill] sm:$0xff] %v1637_v60  ;;  %2550 = vst [vmem:[#allocation36_spill] sm:$0xff] %v1649_v12  ;;  %v1653_v13 = vpop.eup %1110  ;;  %v246_v18 = vadd.f32 %v244_v49, %v240_v57  ;;  %v265_v19 = vmul.f32 %v1603_v43, %v1649_v12  ;;  %v266_v24 = vmul.f32 %v1616_v50, %v1649_v12  ;;  %v1660_v25 = vstv %s1555_s20  ;;  %s1688_s26 = sld [smem:[#allocation4 + $0x102]] }
  0x6c   :  { %2551 = vst [vmem:[#allocation37_spill] sm:$0xff] %v1653_v13  ;;  %2552 = vst [vmem:[#allocation38_spill] sm:$0xff] %v1660_v25  ;;  %v249_v26 = vadd.f32 %v1585_v35, %v245_v63  ;;  %v261_v32 = vadd.f32 %v259_v9, %v255_v58  ;;  %v262_v39 = vadd.f32 %v260_v10, %v256_v59  ;;  %v1683_v44 = vstv %s1569_s25  ;;  %s1692_s27 = sld [smem:[#allocation4 + $0x103]] }
  0x6d   :  { %369 = vst.msk [vmem:[%s2429_s11] ss:$4 sm:$0x3] %vm1530_vm0, %v1637_v60  ;;  %v271_v40 = vmul.f32 %v1629_v54, %v1660_v25  ;;  %1039 = vst.msk [vmem:[%s2429_s11 + $0x8] ss:$4 sm:$0x3] %vm1530_vm0, %v1653_v13  ;;  %v250_v41 = vadd.f32 %v1585_v35, %v246_v18  ;;  %v272_v42 = vmul.f32 %v1642_v62, %v1660_v25  ;;  %v1686_v47 = vstv %s1587_s6 }
  0x6e   :  { %2553 = vst [vmem:[#allocation39_spill] sm:$0xff] %v1683_v44  ;;  %2554 = vst [vmem:[#allocation40_spill] sm:$0xff] %v1686_v47  ;;  %1120 = vtanh.f32 %v249_v26  ;;  %v267_v48 = vadd.f32 %v265_v19, %v261_v32  ;;  %v268_v49 = vadd.f32 %v266_v24, %v262_v39  ;;  %v283_v51 = vmul.f32 %v1686_v47, %v1560_v21  ;;  %s1708_s25 = sld [smem:[#allocation6 + $0x2]] }
  0x6f   :  { %1122 = vtanh.f32 %v250_v41  ;;  %v284_v57 = vmul.f32 %v1565_v23, %v1686_v47  ;;  %v1697_v58 = vstv %s1598_s29  ;;  %v1700_v59 = vstv %s1611_s30  ;;  %s1722_s6 = sld [smem:[#allocation4 + $0x180]] }
  0x70   :  { %2555 = vst [vmem:[#allocation41_spill] sm:$0xff] %v1697_v58  ;;  %2556 = vst [vmem:[#allocation42_spill] sm:$0xff] %v1700_v59  ;;  %v1702_v63 = vpop.eup %1112  ;;  %v273_v9 = vadd.f32 %v271_v40, %v267_v48  ;;  %v274_v10 = vadd.f32 %v272_v42, %v268_v49  ;;  %v287_v18 = vmul.f32 %v1574_v31, %v1697_v58  ;;  %v1717_v39 = vstv %s1624_s15  ;;  %s1732_s29 = sld [smem:[#allocation4 + $0x181]] }
  0x71   :  { %2557 = vst [vmem:[#allocation43_spill] sm:$0xff] %v1702_v63  ;;  %v288_v19 = vmul.f32 %v1592_v36, %v1697_v58  ;;  %v1710_v24 = vpop.eup %1114  ;;  %v293_v26 = vmul.f32 %v1603_v43, %v1700_v59  ;;  %v294_v32 = vmul.f32 %v1616_v50, %v1700_v59  ;;  %2559 = vst [vmem:[#allocation45_spill] sm:$0xff] %v1717_v39  ;;  %v1720_v40 = vstv %s1635_s18  ;;  %s1750_s30 = sld [smem:[#allocation4 + $0x182]] }
  0x72   :  { %2558 = vst [vmem:[#allocation44_spill] sm:$0xff] %v1710_v24  ;;  %2560 = vst [vmem:[#allocation46_spill] sm:$0xff] %v1720_v40  ;;  %v277_v41 = vadd.f32 %v1683_v44, %v273_v9  ;;  %v278_v42 = vadd.f32 %v1683_v44, %v274_v10  ;;  %v289_v48 = vadd.f32 %v287_v18, %v283_v51  ;;  %v1745_v9 = vstv %s1651_s21  ;;  %s1754_s13 = sld [smem:[#allocation4 + $0x183]] }
  0x73   :  { %1041 = vst.msk [vmem:[%s2429_s11 + $0x1] ss:$4 sm:$0x3] %vm1530_vm0, %v1702_v63  ;;  %v290_v49 = vadd.f32 %v288_v19, %v284_v57  ;;  %1042 = vst.msk [vmem:[%s2429_s11 + $0x9] ss:$4 sm:$0x3] %vm1530_vm0, %v1710_v24  ;;  %v299_v30 = vmul.f32 %v1629_v54, %v1717_v39  ;;  %v300_v59 = vmul.f32 %v1642_v62, %v1717_v39  ;;  %v1748_v51 = vstv %s1662_s22 }
  0x74   :  { %2561 = vst [vmem:[#allocation47_spill] sm:$0xff] %v1745_v9  ;;  %2562 = vst [vmem:[#allocation48_spill] sm:$0xff] %v1748_v51  ;;  %1124 = vtanh.f32 %v277_v41  ;;  %v295_v57 = vadd.f32 %v293_v26, %v289_v48  ;;  %v311_v18 = vmul.f32 %v1745_v9, %v1560_v21  ;;  %v312_v44 = vmul.f32 %v1565_v23, %v1745_v9  ;;  %s1772_s14 = sld [smem:[#allocation6 + $0x3]] }
  0x75   :  { %v296_v10 = vadd.f32 %v294_v32, %v290_v49  ;;  %v1756_v19 = vpop.eup %1116  ;;  %1126 = vtanh.f32 %v278_v42  ;;  %v315_v39 = vmul.f32 %v1574_v31, %v1748_v51  ;;  %v316_v58 = vmul.f32 %v1592_v36, %v1748_v51  ;;  %s1790_s19 = sld [smem:[#allocation11]] }
  0x76   :  { %2563 = vst [vmem:[#allocation49_spill] sm:$0xff] %v1756_v19  ;;  %v1764_v41 = vpop.eup %1118  ;;  %v301_v26 = vadd.f32 %v299_v30, %v295_v57  ;;  %v1767_v48 = vstv %s1688_s26  ;;  %v1770_v49 = vstv %s1692_s27  ;;  %1045 = vst.msk [vmem:[%s2429_s11 + $0x2] ss:$4 sm:$0x3] %vm1530_vm0, %v1756_v19  ;;  %s1798_s2 = sld [smem:[#allocation11 + $0x1]]  ;;  %v1804_v9 = vstv %s1722_s6 }
  0x77   :  { %2564 = vst [vmem:[#allocation50_spill] sm:$0xff] %v1764_v41  ;;  %v302_v32 = vadd.f32 %v300_v59, %v296_v10  ;;  %2565 = vst [vmem:[#allocation51_spill] sm:$0xff] %v1767_v48  ;;  %v317_v42 = vadd.f32 %v315_v39, %v311_v18  ;;  %v318_v51 = vadd.f32 %v316_v58, %v312_v44  ;;  %s1817_s21 = sld [smem:[#allocation11 + $0x2]]  ;;  %v1824_v47 = vstv %s1750_s30 }
  0x78   :  { %2566 = vst [vmem:[#allocation52_spill] sm:$0xff] %v1770_v49  ;;  %v321_v30 = vmul.f32 %v1603_v43, %v1767_v48  ;;  %v322_v59 = vmul.f32 %v1616_v50, %v1767_v48  ;;  %1046 = vst.msk [vmem:[%s2429_s11 + $0xa] ss:$4 sm:$0x3] %vm1530_vm0, %v1764_v41  ;;  %v305_v57 = vadd.f32 %v1720_v40, %v301_v26  ;;  %v1801_v48 = vstv %s1708_s25  ;;  %s1835_s23 = sld [smem:[#allocation12]] }
  0x79   :  { %v306_v44 = vadd.f32 %v1720_v40, %v302_v32  ;;  %v327_v58 = vmul.f32 %v1629_v54, %v1770_v49  ;;  %v328_v39 = vmul.f32 %v1642_v62, %v1770_v49  ;;  %2567 = vst [vmem:[#allocation53_spill] sm:$0xff] %v1801_v48  ;;  %2568 = vst [vmem:[#allocation54_spill] sm:$0xff] %v1804_v9  ;;  %v1811_v40 = vstv %s1732_s29  ;;  %s1847_s26 = sld [smem:[#allocation12 + $0x1]] }
  0x7a   :  { %v323_v10 = vadd.f32 %v321_v30, %v317_v42  ;;  %v324_v18 = vadd.f32 %v322_v59, %v318_v51  ;;  %1128 = vtanh.f32 %v305_v57  ;;  %v339_v26 = vmul.f32 %v1804_v9, %v1560_v21  ;;  %2569 = vst [vmem:[#allocation55_spill] sm:$0xff] %v1811_v40  ;;  %2572 = vst [vmem:[#allocation58_spill] sm:$0xff] %v1824_v47  ;;  %s1864_s27 = sld [smem:[#allocation12 + $0x2]] }
  0x7b   :  { %v340_v32 = vmul.f32 %v1565_v23, %v1804_v9  ;;  %v1813_v49 = vpop.eup %1120  ;;  %1130 = vtanh.f32 %v306_v44  ;;  %v343_v51 = vmul.f32 %v1574_v31, %v1811_v40  ;;  %v344_v57 = vmul.f32 %v1592_v36, %v1811_v40  ;;  %s1904_s29 = sld [smem:[#allocation12 + $0x3]] }
  0x7c   :  { %2570 = vst [vmem:[#allocation56_spill] sm:$0xff] %v1813_v49  ;;  %v329_v42 = vadd.f32 %v327_v58, %v323_v10  ;;  %v330_v30 = vadd.f32 %v328_v39, %v324_v18  ;;  %v1819_v59 = vpop.eup %1122  ;;  %v1827_v9 = vstv %s1754_s13  ;;  %1049 = vst.msk [vmem:[%s2429_s11 + $0x3] ss:$4 sm:$0x3] %vm1530_vm0, %v1813_v49  ;;  %v349_v10 = vmul.f32 %v1603_v43, %v1824_v47 }
  0x7d   :  { %2571 = vst [vmem:[#allocation57_spill] sm:$0xff] %v1819_v59  ;;  %2573 = vst [vmem:[#allocation59_spill] sm:$0xff] %v1827_v9  ;;  %v345_v39 = vadd.f32 %v343_v51, %v339_v26  ;;  %v346_v18 = vadd.f32 %v344_v57, %v340_v32  ;;  %v356_v26 = vmul.f32 %v1642_v62, %v1827_v9  ;;  %v400_v8 = vstv %s1790_s19 }
  0x7e   :  { %v333_v44 = vadd.f32 %v1801_v48, %v329_v42  ;;  %v334_v58 = vadd.f32 %v1801_v48, %v330_v30  ;;  %1050 = vst.msk [vmem:[%s2429_s11 + $0xb] ss:$4 sm:$0x3] %vm1530_vm0, %v1819_v59  ;;  %v350_v42 = vmul.f32 %v1616_v50, %v1824_v47  ;;  %v355_v30 = vmul.f32 %v1629_v54, %v1827_v9  ;;  %s1860_s11 = sld [smem:[#allocation11 + $0x3]] }
  0x7f   :  { %v351_v51 = vadd.f32 %v349_v10, %v345_v39  ;;  %v1856_v48 = vstv %s1772_s14  ;;  %v404_v6 = vstv %s1798_s2  ;;  %v463_v9 = vmul.f32 %v1427_v7, %v1560_v21 }
  0x80   :  { %1132 = vtanh.f32 %v333_v44  ;;  %2574 = vst [vmem:[#allocation60_spill] sm:$0xff] %v1856_v48  ;;  %v352_v40 = vadd.f32 %v350_v42, %v346_v18  ;;  %v467_v10 = vmul.f32 %v1574_v31, %v1438_v11  ;;  %v468_v18 = vmul.f32 %v1592_v36, %v1438_v11 }
  0x81   :  { %1134 = vtanh.f32 %v334_v58  ;;  %v1862_v32 = vpop.eup %1124  ;;  %v357_v57 = vadd.f32 %v355_v30, %v351_v51  ;;  %v464_v58 = vmul.f32 %v1565_v23, %v1427_v7  ;;  %v405_v30 = vmul.f32 %v1702_v63, %v404_v6 }
  0x82   :  { %v1868_v44 = vpop.eup %1126  ;;  %v358_v39 = vadd.f32 %v356_v26, %v352_v40  ;;  %372 = vst.msk [vmem:[%s2430_s12] ss:$4 sm:$0x3] %vm1530_vm0, %v1862_v32  ;;  %v401_v40 = vmul.f32 %v1637_v60, %v400_v8  ;;  %v410_v51 = vstv %s1817_s21  ;;  %v426_v7 = vstv %s1835_s23 }
  0x83   :  { %v361_v42 = vadd.f32 %v1856_v48, %v357_v57  ;;  %1040 = vst.msk [vmem:[%s2430_s12 + $0x8] ss:$4 sm:$0x3] %vm1530_vm0, %v1868_v44  ;;  %v402_v11 = vmul.f32 %v1653_v13, %v400_v8  ;;  %v406_v57 = vmul.f32 %v1710_v24, %v404_v6  ;;  %v430_v47 = vstv %s1847_s26 }
  0x84   :  { %v362_v26 = vadd.f32 %v1856_v48, %v358_v39  ;;  %v469_v25 = vadd.f32 %v467_v10, %v463_v9  ;;  %v470_v5 = vadd.f32 %v468_v18, %v464_v58  ;;  %v473_v4 = vmul.f32 %v1603_v43, %v1444_v14 }
  0x85   :  { %1136 = vtanh.f32 %v361_v42  ;;  %v407_v63 = vadd.f32 %v405_v30, %v401_v40  ;;  %v411_v39 = vmul.f32 %v1756_v19, %v410_v51  ;;  %v412_v42 = vmul.f32 %v1764_v41, %v410_v51 }
  0x86   :  { %1138 = vtanh.f32 %v362_v26  ;;  %v427_v48 = vmul.f32 %v1862_v32, %v426_v7  ;;  %v416_v8 = vstv %s1860_s11  ;;  %v428_v9 = vmul.f32 %v1868_v44, %v426_v7 }
  0x87   :  { %v1899_v60 = vpop.eup %1128  ;;  %v491_v10 = vmul.f32 %v1456_v22, %v1560_v21  ;;  %v408_v18 = vadd.f32 %v406_v57, %v402_v11  ;;  %v436_v30 = vstv %s1864_s27  ;;  %v474_v26 = vmul.f32 %v1616_v50, %v1444_v14 }
  0x88   :  { %v1906_v6 = vpop.eup %1130  ;;  %1043 = vst.msk [vmem:[%s2430_s12 + $0x1] ss:$4 sm:$0x3] %vm1530_vm0, %v1899_v60  ;;  %v431_v58 = vmul.f32 %v1899_v60, %v430_v47  ;;  %v475_v7 = vadd.f32 %v473_v4, %v469_v25  ;;  %v479_v51 = vmul.f32 %v1629_v54, %v1450_v17  ;;  %v492_v41 = vmul.f32 %v1565_v23, %v1456_v22 }
  0x89   :  { %1044 = vst.msk [vmem:[%s2430_s12 + $0x9] ss:$4 sm:$0x3] %vm1530_vm0, %v1906_v6  ;;  %v432_v40 = vmul.f32 %v1906_v6, %v430_v47  ;;  %v495_v19 = vmul.f32 %v1574_v31, %v1467_v28  ;;  %v1935_v24 = vadd.f32 %v411_v39, %v407_v63  ;;  %v1938_v11 = vmul.f32 %v1813_v49, %v416_v8 }
  0x8a   :  { %v1941_v47 = vmul.f32 %v1819_v59, %v416_v8  ;;  %v433_v57 = vadd.f32 %v431_v58, %v427_v48  ;;  %v496_v25 = vmul.f32 %v1592_v36, %v1467_v28  ;;  %v501_v14 = vmul.f32 %v1603_v43, %v1469_v29 }
  0x8b   :  { %v434_v4 = vadd.f32 %v432_v40, %v428_v9  ;;  %v497_v22 = vadd.f32 %v495_v19, %v491_v10  ;;  %v1957_v48 = vadd.f32 %v412_v42, %v408_v18  ;;  %v476_v8 = vadd.f32 %v474_v26, %v470_v5 }
  0x8c   :  { %v480_v19 = vmul.f32 %v1642_v62, %v1450_v17  ;;  %v481_v58 = vadd.f32 %v479_v51, %v475_v7  ;;  %v498_v10 = vadd.f32 %v496_v25, %v492_v41  ;;  %v502_v42 = vmul.f32 %v1616_v50, %v1469_v29 }
  0x8d   :  { %v1943_v13 = vpop.eup %1132  ;;  %v442_v40 = vstv %s1904_s29  ;;  %v503_v5 = vadd.f32 %v501_v14, %v497_v22  ;;  %v507_v26 = vmul.f32 %v1629_v54, %v1483_v37  ;;  %v508_v28 = vmul.f32 %v1642_v62, %v1483_v37 }
  0x8e   :  { %v1949_v63 = vpop.eup %1134  ;;  %1047 = vst.msk [vmem:[%s2430_s12 + $0x2] ss:$4 sm:$0x3] %vm1530_vm0, %v1943_v13  ;;  %v437_v39 = vmul.f32 %v1943_v13, %v436_v30  ;;  %v504_v49 = vadd.f32 %v502_v42, %v498_v10  ;;  %v519_v17 = vmul.f32 %v1497_v45, %v1560_v21  ;;  %v520_v41 = vmul.f32 %v1565_v23, %v1497_v45 }
  0x8f   :  { %1048 = vst.msk [vmem:[%s2430_s12 + $0xa] ss:$4 sm:$0x3] %vm1530_vm0, %v1949_v63  ;;  %v438_v9 = vmul.f32 %v1949_v63, %v436_v30  ;;  %v482_v30 = vadd.f32 %v480_v19, %v476_v8  ;;  %v523_v7 = vmul.f32 %v1574_v31, %v1499_v46  ;;  %v524_v14 = vmul.f32 %v1592_v36, %v1499_v46 }
  0x90   :  { %v439_v18 = vadd.f32 %v437_v39, %v433_v57  ;;  %v485_v51 = vadd.f32 %v481_v58, %v1465_v27  ;;  %v509_v57 = vadd.f32 %v507_v26, %v503_v5  ;;  %v530_v25 = vmul.f32 %v1616_v50, %v1516_v55 }
  0x91   :  { %v440_v59 = vadd.f32 %v438_v9, %v434_v4  ;;  %v529_v4 = vmul.f32 %v1603_v43, %v1516_v55  ;;  %v525_v19 = vadd.f32 %v523_v7, %v519_v17  ;;  %v526_v9 = vadd.f32 %v524_v14, %v520_v41 }
  0x92   :  { %v1984_v22 = vpop.eup %1136  ;;  %v535_v58 = vmul.f32 %v1629_v54, %v1519_v56  ;;  %v510_v42 = vadd.f32 %v508_v28, %v504_v49  ;;  %v536_v5 = vmul.f32 %v1642_v62, %v1519_v56  ;;  %v547_v17 = vmul.f32 %v1544_v16, %v1560_v21 }
  0x93   :  { %v1991_v39 = vpop.eup %1138  ;;  %1051 = vst.msk [vmem:[%s2430_s12 + $0x3] ss:$4 sm:$0x3] %vm1530_vm0, %v1984_v22  ;;  %v443_v8 = vmul.f32 %v1984_v22, %v442_v40  ;;  %v486_v41 = vadd.f32 %v482_v30, %v1465_v27  ;;  %v531_v7 = vadd.f32 %v529_v4, %v525_v19  ;;  %v532_v14 = vadd.f32 %v530_v25, %v526_v9 }
  0x94   :  { %1052 = vst.msk [vmem:[%s2430_s12 + $0xb] ss:$4 sm:$0x3] %vm1530_vm0, %v1991_v39  ;;  %v444_v10 = vmul.f32 %v1991_v39, %v442_v40  ;;  %1140 = vtanh.f32 %v485_v51  ;;  %v548_v55 = vmul.f32 %v1565_v23, %v1544_v16  ;;  %v551_v28 = vmul.f32 %v1574_v31, %v1553_v20 }
  0x95   :  { %v2013_v26 = vadd.f32 %v443_v8, %v439_v18  ;;  %v513_v49 = vadd.f32 %v509_v57, %v1485_v38  ;;  %v537_v40 = vadd.f32 %v535_v58, %v531_v7  ;;  %v538_v56 = vadd.f32 %v536_v5, %v532_v14 }
  0x96   :  { %v2016_v61 = vadd.f32 %v444_v10, %v440_v59  ;;  %v552_v18 = vmul.f32 %v1592_v36, %v1553_v20  ;;  %v514_v30 = vadd.f32 %v510_v42, %v1485_v38  ;;  %v553_v4 = vadd.f32 %v551_v28, %v547_v17  ;;  %v2575_v28 = vld [vmem:[#allocation18_spill] sm:$0xff] }
  0x97   :  { %v557_v59 = vmul.f32 %v1603_v43, %v1579_v33  ;;  %v558_v51 = vmul.f32 %v1616_v50, %v1579_v33  ;;  %1142 = vtanh.f32 %v486_v41  ;;  %v541_v57 = vadd.f32 %v537_v40, %v1541_v15 }
  0x98   :  { %v554_v8 = vadd.f32 %v552_v18, %v548_v55  ;;  %v542_v19 = vadd.f32 %v538_v56, %v1541_v15  ;;  %v563_v58 = vmul.f32 %v1629_v54, %v1582_v34  ;;  %v564_v10 = vmul.f32 %v1642_v62, %v1582_v34  ;;  %v2588_v15 = vld [vmem:[#allocation52_spill] sm:$0xff] }
  0x99   :  { %v559_v9 = vadd.f32 %v557_v59, %v553_v4  ;;  %v2041_v42 = vadd.f32 %v1938_v11, %v1935_v24  ;;  %1144 = vtanh.f32 %v513_v49  ;;  %v575_v17 = vmul.f32 %v1619_v52, %v1393_v0  ;;  %v2577_v4 = vld [vmem:[#allocation38_spill] sm:$0xff]  ;;  %v2578_v59 = vld [vmem:[#allocation20_spill] sm:$0xff] }
  0x9a   :  { %v560_v5 = vadd.f32 %v558_v51, %v554_v8  ;;  %v2047_v55 = vadd.f32 %v1941_v47, %v1957_v48  ;;  %1146 = vtanh.f32 %v514_v30  ;;  %v576_v41 = vmul.f32 %v1398_v1, %v1619_v52  ;;  %v2576_v48 = vld [vmem:[#allocation19_spill] sm:$0xff] }
  0x9b   :  { %v565_v56 = vadd.f32 %v563_v58, %v559_v9  ;;  %1148 = vtanh.f32 %v541_v57  ;;  %v579_v24 = vmul.f32 %v1403_v2, %v1622_v53  ;;  %v580_v11 = vmul.f32 %v1408_v3, %v1622_v53  ;;  %v2579_v57 = vld [vmem:[#allocation22_spill] sm:$0xff]  ;;  %v2586_v53 = vld [vmem:[#allocation39_spill] sm:$0xff] }
  0x9c   :  { %v566_v7 = vadd.f32 %v564_v10, %v560_v5  ;;  %1150 = vtanh.f32 %v542_v19  ;;  %v585_v47 = vmul.f32 %v2575_v28, %v1649_v12  ;;  %v586_v49 = vmul.f32 %v2576_v48, %v1649_v12  ;;  %v2580_v19 = vld [vmem:[#allocation40_spill] sm:$0xff] }
  0x9d   :  { %v569_v14 = vadd.f32 %v565_v56, %v1585_v35  ;;  %v581_v18 = vadd.f32 %v579_v24, %v575_v17  ;;  %v582_v30 = vadd.f32 %v580_v11, %v576_v41  ;;  %v591_v51 = vmul.f32 %v2578_v59, %v2577_v4  ;;  %v2581_v56 = vld [vmem:[#allocation41_spill] sm:$0xff]  ;;  %v2585_v12 = vld [vmem:[#allocation48_spill] sm:$0xff] }
  0x9e   :  { %v570_v40 = vadd.f32 %v566_v7, %v1585_v35  ;;  %v592_v8 = vmul.f32 %v2579_v57, %v2577_v4  ;;  %v603_v9 = vmul.f32 %v2580_v19, %v1393_v0  ;;  %v604_v58 = vmul.f32 %v1398_v1, %v2580_v19  ;;  %v2582_v7 = vld [vmem:[#allocation42_spill] sm:$0xff] }
  0x9f   :  { %1152 = vtanh.f32 %v569_v14  ;;  %v587_v10 = vadd.f32 %v585_v47, %v581_v18  ;;  %v588_v5 = vadd.f32 %v586_v49, %v582_v30  ;;  %v607_v17 = vmul.f32 %v1403_v2, %v2581_v56  ;;  %v2583_v14 = vld [vmem:[#allocation45_spill] sm:$0xff] }
  0xa0   :  { %1154 = vtanh.f32 %v570_v40  ;;  %v608_v41 = vmul.f32 %v1408_v3, %v2581_v56  ;;  %v613_v24 = vmul.f32 %v2575_v28, %v2582_v7  ;;  %v614_v11 = vmul.f32 %v2576_v48, %v2582_v7  ;;  %v2584_v56 = vld [vmem:[#allocation47_spill] sm:$0xff] }
  0xa1   :  { %v619_v25 = vmul.f32 %v2578_v59, %v2583_v14  ;;  %v2079_v35 = vpop.eup %1140  ;;  %v593_v40 = vadd.f32 %v591_v51, %v587_v10  ;;  %v594_v47 = vadd.f32 %v592_v8, %v588_v5  ;;  %v609_v49 = vadd.f32 %v607_v17, %v603_v9  ;;  %v2587_v5 = vld [vmem:[#allocation51_spill] sm:$0xff] }
  0xa2   :  { %v620_v18 = vmul.f32 %v2579_v57, %v2583_v14  ;;  %v610_v30 = vadd.f32 %v608_v41, %v604_v58  ;;  %v631_v19 = vmul.f32 %v2584_v56, %v1393_v0  ;;  %v632_v4 = vmul.f32 %v1398_v1, %v2584_v56 }
  0xa3   :  { %v635_v7 = vmul.f32 %v1403_v2, %v2585_v12  ;;  %v597_v52 = vadd.f32 %v593_v40, %v2586_v53  ;;  %v598_v34 = vadd.f32 %v594_v47, %v2586_v53  ;;  %v615_v51 = vadd.f32 %v613_v24, %v609_v49  ;;  %v2590_v53 = vld [vmem:[#allocation54_spill] sm:$0xff] }
  0xa4   :  { %v636_v8 = vmul.f32 %v1408_v3, %v2585_v12  ;;  %v1143_v9 = vpop.eup %1142  ;;  %v616_v10 = vadd.f32 %v614_v11, %v610_v30  ;;  %v641_v17 = vmul.f32 %v2575_v28, %v2587_v5  ;;  %v642_v41 = vmul.f32 %v2576_v48, %v2587_v5 }
  0xa5   :  { %v637_v58 = vadd.f32 %v635_v7, %v631_v19  ;;  %1156 = vtanh.f32 %v597_v52  ;;  %v621_v56 = vadd.f32 %v619_v25, %v615_v51  ;;  %v647_v40 = vmul.f32 %v2578_v59, %v2588_v15  ;;  %v2589_v7 = vld [vmem:[#allocation46_spill] sm:$0xff] }
  0xa6   :  { %v638_v14 = vadd.f32 %v636_v8, %v632_v4  ;;  %v1145_v47 = vpop.eup %1144  ;;  %1158 = vtanh.f32 %v598_v34  ;;  %v622_v24 = vadd.f32 %v620_v18, %v616_v10  ;;  %v648_v11 = vmul.f32 %v2579_v57, %v2588_v15  ;;  %v2591_v34 = vld [vmem:[#allocation55_spill] sm:$0xff] }
  0xa7   :  { %v643_v49 = vadd.f32 %v641_v17, %v637_v58  ;;  %v1147_v19 = vpop.eup %1146  ;;  %v625_v30 = vadd.f32 %v621_v56, %v2589_v7  ;;  %v659_v5 = vmul.f32 %v2590_v53, %v1393_v0  ;;  %v660_v52 = vmul.f32 %v1398_v1, %v2590_v53 }
  0xa8   :  { %v644_v12 = vadd.f32 %v642_v41, %v638_v14  ;;  %v1149_v25 = vpop.eup %1148  ;;  %v626_v4 = vadd.f32 %v622_v24, %v2589_v7  ;;  %v663_v18 = vmul.f32 %v1403_v2, %v2591_v34  ;;  %v664_v8 = vmul.f32 %v1408_v3, %v2591_v34  ;;  %v2592_v14 = vld [vmem:[#allocation58_spill] sm:$0xff]  ;;  %v2593_v41 = vld [vmem:[#allocation53_spill] sm:$0xff] }
  0xa9   :  { %v649_v51 = vadd.f32 %v647_v40, %v643_v49  ;;  %v2111_v10 = vpop.eup %1150  ;;  %1160 = vtanh.f32 %v625_v30  ;;  %v669_v58 = vmul.f32 %v2575_v28, %v2592_v14  ;;  %v670_v17 = vmul.f32 %v2576_v48, %v2592_v14 }
  0xaa   :  { %v650_v56 = vadd.f32 %v648_v11, %v644_v12  ;;  %1162 = vtanh.f32 %v626_v4  ;;  %v665_v40 = vadd.f32 %v663_v18, %v659_v5  ;;  %v666_v49 = vadd.f32 %v664_v8, %v660_v52  ;;  %v2596_v52 = vld [vmem:[#allocation59_spill] sm:$0xff] }
  0xab   :  { %v653_v24 = vadd.f32 %v649_v51, %v2593_v41  ;;  %v2594_v12 = vstv %s2425_s7  ;;  %v675_v4 = vmul.f32 %v2578_v59, %v2596_v52  ;;  %v676_v51 = vmul.f32 %v2579_v57, %v2596_v52 }
  0xac   :  { %v2118_v53 = vpop.eup %1152  ;;  %v654_v7 = vadd.f32 %v650_v56, %v2593_v41  ;;  %v423_v28 = vadd.f32 %v2594_v12, %v2041_v42  ;;  %v2595_v48 = vmov %v2594_v12  ;;  %v671_v5 = vadd.f32 %v669_v58, %v665_v40  ;;  %v2600_v12 = vld [vmem:[#allocation23_spill] sm:$0xff] }
  0xad   :  { %v2121_v34 = vpop.eup %1154  ;;  %v424_v11 = vadd.f32 %v2595_v48, %v2047_v55  ;;  %v672_v30 = vadd.f32 %v670_v17, %v666_v49  ;;  %v448_v18 = vstv %s2427_s9  ;;  %1164 = vtanh.f32 %v653_v24 }
  0xae   :  { %v685_v42 = vsub.f32 %v2079_v35, %v1560_v21  ;;  %1166 = vtanh.f32 %v654_v7  ;;  %v686_v8 = vsub.f32 %v1143_v9, %v1565_v23  ;;  %v689_v55 = vsub.f32 %v1145_v47, %v1574_v31  ;;  %v2599_v35 = vld [vmem:[#allocation21_spill] sm:$0xff] }
  0xaf   :  { %v690_v56 = vsub.f32 %v1147_v19, %v1592_v36  ;;  %v2145_v58 = vadd.f32 -1.0, %v423_v28  ;;  %v2148_v59 = vadd.f32 %v448_v18, %v2013_v26  ;;  %v2150_v57 = vadd.f32 -1.0, %v424_v11  ;;  %v2602_v11 = vld [vmem:[#allocation60_spill] sm:$0xff] }
  0xb0   :  { %v677_v17 = vadd.f32 %v675_v4, %v671_v5  ;;  %v678_v40 = vadd.f32 %v676_v51, %v672_v30  ;;  %v687_v49 = vand.u32 2147483647, %v685_v42  ;;  %v695_v21 = vsub.f32 %v1149_v25, %v1603_v43  ;;  %v2601_v25 = vld [vmem:[#allocation24_spill] sm:$0xff]  ;;  %v2604_v42 = vld [vmem:[#allocation25_spill] sm:$0xff] }
  0xb1   :  { %2597 = vst [vmem:[#allocation18_spill] sm:$0xff] %v2145_v58  ;;  %2598 = vst [vmem:[#allocation19_spill] sm:$0xff] %v2150_v57  ;;  %v731_v23 = vmul.f32 %v1862_v32, %v2599_v35  ;;  %v732_v31 = vmul.f32 %v1868_v44, %v2599_v35  ;;  %v2158_v9 = vadd.f32 %v448_v18, %v2016_v61  ;;  %v688_v26 = vand.u32 2147483647, %v686_v8 }
  0xb2   :  { %v1157_v24 = vpop.eup %1156  ;;  %v691_v47 = vand.u32 2147483647, %v689_v55  ;;  %v692_v19 = vand.u32 2147483647, %v690_v56  ;;  %v696_v7 = vsub.f32 %v2111_v10, %v1616_v50  ;;  %v733_v28 = vmul.f32 %v1899_v60, %v2600_v12 }
  0xb3   :  { %v1159_v36 = vpop.eup %1158  ;;  %v734_v43 = vmul.f32 %v1906_v6, %v2600_v12  ;;  %v737_v48 = vmul.f32 %v1943_v13, %v2601_v25  ;;  %v681_v5 = vadd.f32 %v677_v17, %v2602_v11  ;;  %v682_v61 = vadd.f32 %v678_v40, %v2602_v11  ;;  %v2605_v40 = vld [vmem:[#allocation26_spill] sm:$0xff] }
  0xb4   :  { %v738_v4 = vmul.f32 %v1949_v63, %v2601_v25  ;;  %v2174_v10 = vand.u32 2147483647, %v695_v21  ;;  %v735_v51 = vadd.f32 %v733_v28, %v731_v23  ;;  %v741_v8 = vmul.f32 %v1984_v22, %v2604_v42  ;;  %v2606_v28 = vld [vmem:[#allocation27_spill] sm:$0xff] }
  0xb5   :  { %v736_v18 = vadd.f32 %v734_v43, %v732_v31  ;;  %v742_v17 = vmul.f32 %v1991_v39, %v2604_v42  ;;  %v749_v35 = vmul.f32 %v1862_v32, %v2605_v40  ;;  %v750_v12 = vmul.f32 %v1868_v44, %v2605_v40 }
  0xb6   :  { %v1161_v50 = vpop.eup %1160  ;;  %2603 = vst [vmem:[#allocation20_spill] sm:$0xff] %v2174_v10  ;;  %v707_v21 = vsub.f32 %v1157_v24, %v1393_v0  ;;  %v739_v23 = vadd.f32 %v737_v48, %v735_v51  ;;  %v751_v43 = vmul.f32 %v1899_v60, %v2606_v28  ;;  %v752_v56 = vmul.f32 %v1906_v6, %v2606_v28 }
  0xb7   :  { %v1163_v55 = vpop.eup %1162  ;;  %v740_v31 = vadd.f32 %v738_v4, %v736_v18  ;;  %v711_v25 = vsub.f32 %v1161_v50, %v1403_v2  ;;  %v755_v42 = vmul.f32 %v1943_v13, %v1469_v29  ;;  %v756_v30 = vmul.f32 %v1949_v63, %v1469_v29 }
  0xb8   :  { %v708_v40 = vsub.f32 %v1159_v36, %v1398_v1  ;;  %v712_v0 = vsub.f32 %v1163_v55, %v1408_v3  ;;  %v743_v24 = vadd.f32 %v741_v8, %v739_v23  ;;  %1168 = vtanh.f32 %v681_v5 }
  0xb9   :  { %v744_v48 = vadd.f32 %v742_v17, %v740_v31  ;;  %v2198_v51 = vadd.f32 %v691_v47, %v687_v49  ;;  %v753_v2 = vadd.f32 %v751_v43, %v749_v35  ;;  %v754_v50 = vadd.f32 %v752_v56, %v750_v12 }
  0xba   :  { %v1165_v4 = vpop.eup %1164  ;;  %1170 = vtanh.f32 %v682_v61  ;;  %v2200_v28 = vadd.f32 %v692_v19, %v688_v26  ;;  %v2202_v57 = vand.u32 2147483647, %v696_v7  ;;  %v709_v58 = vand.u32 2147483647, %v707_v21  ;;  %v2607_v21 = vld [vmem:[#allocation28_spill] sm:$0xff] }
  0xbb   :  { %v1167_v18 = vpop.eup %1166  ;;  %v713_v29 = vand.u32 2147483647, %v711_v25  ;;  %v757_v10 = vadd.f32 %v755_v42, %v753_v2  ;;  %v758_v1 = vadd.f32 %v756_v30, %v754_v50  ;;  %v759_v3 = vmul.f32 %v1984_v22, %v1483_v37  ;;  %v2213_v26 = vld [vmem:[%s2419_s1 + $0x2] ss:$4 sm:$0x3] }
  0xbc   :  { %v710_v36 = vand.u32 2147483647, %v708_v40  ;;  %v714_v8 = vand.u32 2147483647, %v712_v0  ;;  %v760_v49 = vmul.f32 %v1991_v39, %v1483_v37  ;;  %v767_v47 = vmul.f32 %v1862_v32, %v1497_v45 }
  0xbd   :  { %v717_v19 = vsub.f32 %v1165_v4, %v2213_v26  ;;  %v2219_v7 = vld [vmem:[%s2419_s1 + $0xa] ss:$4 sm:$0x3]  ;;  %v761_v61 = vadd.f32 %v759_v3, %v757_v10  ;;  %v768_v37 = vmul.f32 %v1868_v44, %v1497_v45  ;;  %v745_v30 = vadd.f32 %v743_v24, %v1465_v27 }
  0xbe   :  { %v718_v5 = vsub.f32 %v1167_v18, %v2219_v7  ;;  %v762_v55 = vadd.f32 %v760_v49, %v758_v1  ;;  %v769_v56 = vmul.f32 %v1899_v60, %v1499_v46  ;;  %v770_v17 = vmul.f32 %v1906_v6, %v1499_v46  ;;  %v2610_v49 = vld [vmem:[#allocation31_spill] sm:$0xff] }
  0xbf   :  { %v2229_v35 = vadd.f32 %v713_v29, %v709_v58  ;;  %v746_v12 = vadd.f32 %v744_v48, %v1465_v27  ;;  %v773_v23 = vmul.f32 %v1943_v13, %v2607_v21  ;;  %v774_v10 = vmul.f32 %v1949_v63, %v2607_v21  ;;  %v2608_v58 = vld [vmem:[#allocation29_spill] sm:$0xff]  ;;  %v2617_v21 = vld [vmem:[#allocation36_spill] sm:$0xff] }
  0xc0   :  { %v2236_v45 = vadd.f32 %v714_v8, %v710_v36  ;;  %v763_v31 = vadd.f32 %v761_v61, %v1485_v38  ;;  %v771_v43 = vadd.f32 %v769_v56, %v767_v47  ;;  %v772_v25 = vadd.f32 %v770_v17, %v768_v37  ;;  %v2616_v17 = vld [vmem:[#allocation44_spill] sm:$0xff] }
  0xc1   :  { %v2239_v42 = vand.u32 2147483647, %v717_v19  ;;  %v764_v46 = vadd.f32 %v762_v55, %v1485_v38  ;;  %v777_v40 = vmul.f32 %v1984_v22, %v2608_v58  ;;  %v778_v27 = vmul.f32 %v1991_v39, %v2608_v58  ;;  %v2615_v55 = vld [vmem:[#allocation43_spill] sm:$0xff]  ;;  %v2620_v58 = vld [vmem:[#allocation38_spill] sm:$0xff] }
  0xc2   :  { %v2246_v0 = vand.u32 2147483647, %v718_v5  ;;  %1172 = vtanh.f32 %v745_v30  ;;  %v775_v24 = vadd.f32 %v773_v23, %v771_v43  ;;  %v776_v48 = vadd.f32 %v774_v10, %v772_v25  ;;  %v2612_v5 = vld [vmem:[#allocation35_spill] sm:$0xff]  ;;  %v2614_v30 = vld [vmem:[#allocation34_spill] sm:$0xff]  ;;  %v2618_v23 = vld [vmem:[#allocation49_spill] sm:$0xff] }
  0xc3   :  { %1174 = vtanh.f32 %v746_v12  ;;  %v785_v4 = vmul.f32 %v1862_v32, %v1544_v16  ;;  %v786_v2 = vmul.f32 %v1868_v44, %v1544_v16  ;;  %v787_v38 = vmul.f32 %v1899_v60, %v1553_v20  ;;  %v2609_v16 = vld [vmem:[#allocation30_spill] sm:$0xff] }
  0xc4   :  { %1176 = vtanh.f32 %v763_v31  ;;  %v779_v50 = vadd.f32 %v777_v40, %v775_v24  ;;  %v780_v18 = vadd.f32 %v778_v27, %v776_v48  ;;  %v788_v29 = vmul.f32 %v1906_v6, %v1553_v20  ;;  %v2621_v40 = vld [vmem:[#allocation56_spill] sm:$0xff] }
  0xc5   :  { %1178 = vtanh.f32 %v764_v46  ;;  %v789_v1 = vadd.f32 %v787_v38, %v785_v4  ;;  %v791_v3 = vmul.f32 %v1943_v13, %v1579_v33  ;;  %v792_v32 = vmul.f32 %v1949_v63, %v1579_v33  ;;  %v2260_v36 = vpop.eup %1168  ;;  %v2611_v13 = vld [vmem:[#allocation33_spill] sm:$0xff]  ;;  %v2622_v24 = vld [vmem:[#allocation32_spill] sm:$0xff] }
  0xc6   :  { %v781_v44 = vadd.f32 %v779_v50, %v2609_v16  ;;  %v782_v60 = vadd.f32 %v780_v18, %v2609_v16  ;;  %v790_v8 = vadd.f32 %v788_v29, %v786_v2  ;;  %v795_v47 = vmul.f32 %v1984_v22, %v2610_v49  ;;  %v2613_v33 = vld [vmem:[#allocation37_spill] sm:$0xff]  ;;  %v2624_v38 = vld [vmem:[#allocation40_spill] sm:$0xff] }
  0xc7   :  { %v2266_v19 = vpop.eup %1170  ;;  %v793_v20 = vadd.f32 %v791_v3, %v789_v1  ;;  %v796_v6 = vmul.f32 %v1991_v39, %v2610_v49  ;;  %v803_v61 = vmul.f32 %v2612_v5, %v2611_v13  ;;  %v804_v63 = vmul.f32 %v2613_v33, %v2611_v13  ;;  %v2619_v39 = vld [vmem:[#allocation50_spill] sm:$0xff]  ;;  %v2623_v4 = vld [vmem:[#allocation57_spill] sm:$0xff] }
  0xc8   :  { %1180 = vtanh.f32 %v781_v44  ;;  %v794_v37 = vadd.f32 %v792_v32, %v790_v8  ;;  %v805_v56 = vmul.f32 %v2615_v55, %v2614_v30  ;;  %v806_v22 = vmul.f32 %v2616_v17, %v2614_v30  ;;  %v2625_v32 = vld [vmem:[#allocation41_spill] sm:$0xff] }
  0xc9   :  { %1182 = vtanh.f32 %v782_v60  ;;  %v797_v12 = vadd.f32 %v795_v47, %v793_v20  ;;  %v809_v10 = vmul.f32 %v2618_v23, %v2617_v21  ;;  %v810_v31 = vmul.f32 %v2619_v39, %v2617_v21  ;;  %v2626_v60 = vld [vmem:[#allocation42_spill] sm:$0xff]  ;;  %v2629_v21 = vld [vmem:[#allocation39_spill] sm:$0xff] }
  0xca   :  { %v798_v43 = vadd.f32 %v796_v6, %v794_v37  ;;  %v807_v25 = vadd.f32 %v805_v56, %v803_v61  ;;  %v808_v46 = vadd.f32 %v806_v22, %v804_v63  ;;  %v813_v27 = vmul.f32 %v2621_v40, %v2620_v58  ;;  %v2627_v63 = vld [vmem:[#allocation45_spill] sm:$0xff]  ;;  %v2628_v56 = vld [vmem:[#allocation47_spill] sm:$0xff] }
  0xcb   :  { %v799_v48 = vadd.f32 %v797_v12, %v2622_v24  ;;  %v814_v2 = vmul.f32 %v2623_v4, %v2620_v58  ;;  %v821_v50 = vmul.f32 %v2612_v5, %v2624_v38  ;;  %v822_v18 = vmul.f32 %v2613_v33, %v2624_v38 }
  0xcc   :  { %v800_v29 = vadd.f32 %v798_v43, %v2622_v24  ;;  %v811_v1 = vadd.f32 %v809_v10, %v807_v25  ;;  %v812_v3 = vadd.f32 %v810_v31, %v808_v46  ;;  %v823_v16 = vmul.f32 %v2615_v55, %v2625_v32 }
  0xcd   :  { %1184 = vtanh.f32 %v799_v48  ;;  %v824_v44 = vmul.f32 %v2616_v17, %v2625_v32  ;;  %v827_v8 = vmul.f32 %v2618_v23, %v2626_v60  ;;  %v828_v49 = vmul.f32 %v2619_v39, %v2626_v60 }
  0xce   :  { %1186 = vtanh.f32 %v800_v29  ;;  %v815_v47 = vadd.f32 %v813_v27, %v811_v1  ;;  %v816_v20 = vadd.f32 %v814_v2, %v812_v3  ;;  %v825_v6 = vadd.f32 %v823_v16, %v821_v50  ;;  %v2630_v27 = vld [vmem:[#allocation48_spill] sm:$0xff]  ;;  %v2631_v2 = vld [vmem:[#allocation51_spill] sm:$0xff] }
  0xcf   :  { %v1173_v13 = vpop.eup %1172  ;;  %v826_v61 = vadd.f32 %v824_v44, %v822_v18  ;;  %v831_v37 = vmul.f32 %v2621_v40, %v2627_v63  ;;  %v832_v30 = vmul.f32 %v2623_v4, %v2627_v63  ;;  %v839_v22 = vmul.f32 %v2612_v5, %v2628_v56  ;;  %v2632_v44 = vld [vmem:[#allocation46_spill] sm:$0xff] }
  0xd0   :  { %v1175_v12 = vpop.eup %1174  ;;  %v817_v10 = vadd.f32 %v815_v47, %v2629_v21  ;;  %v818_v31 = vadd.f32 %v816_v20, %v2629_v21  ;;  %v829_v43 = vadd.f32 %v827_v8, %v825_v6  ;;  %v840_v25 = vmul.f32 %v2613_v33, %v2628_v56  ;;  %v2634_v56 = vld [vmem:[#allocation55_spill] sm:$0xff] }
  0xd1   :  { %v1177_v46 = vpop.eup %1176  ;;  %v830_v58 = vadd.f32 %v828_v49, %v826_v61  ;;  %v841_v24 = vmul.f32 %v2615_v55, %v2630_v27  ;;  %v842_v48 = vmul.f32 %v2616_v17, %v2630_v27  ;;  %v845_v38 = vmul.f32 %v2618_v23, %v2631_v2  ;;  %v2633_v49 = vld [vmem:[#allocation54_spill] sm:$0xff]  ;;  %v1207_v27 = vld [vmem:[%s2418_s0 + $0x8] ss:$4 sm:$0x3] }
  0xd2   :  { %v1179_v50 = vpop.eup %1178  ;;  %1188 = vtanh.f32 %v817_v10  ;;  %v833_v18 = vadd.f32 %v831_v37, %v829_v43  ;;  %v846_v29 = vmul.f32 %v2619_v39, %v2631_v2  ;;  %v849_v1 = vmul.f32 %v2621_v40, %v2588_v15 }
  0xd3   :  { %1190 = vtanh.f32 %v818_v31  ;;  %v834_v3 = vadd.f32 %v832_v30, %v830_v58  ;;  %v843_v32 = vadd.f32 %v841_v24, %v839_v22  ;;  %v844_v16 = vadd.f32 %v842_v48, %v840_v25 }
  0xd4   :  { %v835_v60 = vadd.f32 %v833_v18, %v2632_v44  ;;  %v850_v8 = vmul.f32 %v2623_v4, %v2588_v15  ;;  %v857_v47 = vmul.f32 %v2612_v5, %v2633_v49  ;;  %v858_v20 = vmul.f32 %v2613_v33, %v2633_v49 }
  0xd5   :  { %v1181_v6 = vpop.eup %1180  ;;  %v836_v61 = vadd.f32 %v834_v3, %v2632_v44  ;;  %v847_v63 = vadd.f32 %v845_v38, %v843_v32  ;;  %v848_v37 = vadd.f32 %v846_v29, %v844_v16  ;;  %v859_v30 = vmul.f32 %v2615_v55, %v2634_v56  ;;  %v1211_v44 = vld [vmem:[%s2418_s0 + $0xa] ss:$4 sm:$0x3] }
  0xd6   :  { %v1183_v22 = vpop.eup %1182  ;;  %1192 = vtanh.f32 %v835_v60  ;;  %v860_v21 = vmul.f32 %v2616_v17, %v2634_v56  ;;  %v863_v15 = vmul.f32 %v2618_v23, %v2592_v14  ;;  %v864_v5 = vmul.f32 %v2619_v39, %v2592_v14  ;;  %v1206_v17 = vld [vmem:[%s2418_s0] ss:$4 sm:$0x3]  ;;  %v2371_v56 = vld [vmem:[%s2419_s1 + $0x3] ss:$4 sm:$0x3] }
  0xd7   :  { %1194 = vtanh.f32 %v836_v61  ;;  %v851_v33 = vadd.f32 %v849_v1, %v847_v63  ;;  %v852_v10 = vadd.f32 %v850_v8, %v848_v37  ;;  %v861_v31 = vadd.f32 %v859_v30, %v857_v47  ;;  %v1212_v8 = vld [vmem:[%s2418_s0 + $0x3] ss:$4 sm:$0x3]  ;;  %v1213_v61 = vld [vmem:[%s2418_s0 + $0xb] ss:$4 sm:$0x3] }
  0xd8   :  { %v862_v43 = vadd.f32 %v860_v21, %v858_v20  ;;  %v867_v25 = vmul.f32 %v2621_v40, %v2596_v52  ;;  %v868_v55 = vmul.f32 %v2623_v4, %v2596_v52  ;;  %v875_v58 = vsub.f32 %v1173_v13, %v1206_v17  ;;  %v1208_v52 = vld [vmem:[%s2418_s0 + $0x1] ss:$4 sm:$0x3]  ;;  %v1209_v13 = vld [vmem:[%s2418_s0 + $0x9] ss:$4 sm:$0x3] }
  0xd9   :  { %v853_v23 = vadd.f32 %v851_v33, %v2593_v41  ;;  %v854_v14 = vadd.f32 %v852_v10, %v2593_v41  ;;  %v865_v39 = vadd.f32 %v863_v15, %v861_v31  ;;  %v876_v24 = vsub.f32 %v1175_v12, %v1207_v27  ;;  %v1210_v12 = vld [vmem:[%s2418_s0 + $0x2] ss:$4 sm:$0x3]  ;;  %v1215_v15 = vld [vmem:[%s2419_s1 + $0xb] ss:$4 sm:$0x3] }
  0xda   :  { %v1185_v48 = vpop.eup %1184  ;;  %v866_v40 = vadd.f32 %v864_v5, %v862_v43  ;;  %v877_v2 = vand.u32 2147483647, %v875_v58  ;;  %v879_v4 = vsub.f32 %v1177_v46, %v1208_v52  ;;  %v880_v38 = vsub.f32 %v1179_v50, %v1209_v13  ;;  %v2637_v27 = vld [vmem:[#allocation20_spill] sm:$0xff]  ;;  %v1218_v52 = vld [vmem:[%s2419_s1 + $0x1] ss:$4 sm:$0x3] }
  0xdb   :  { %v1187_v41 = vpop.eup %1186  ;;  %1196 = vtanh.f32 %v853_v23  ;;  %v869_v18 = vadd.f32 %v867_v25, %v865_v39  ;;  %v878_v29 = vand.u32 2147483647, %v876_v24  ;;  %v885_v1 = vsub.f32 %v1181_v6, %v1210_v12  ;;  %v2639_v12 = vld [vmem:[#allocation19_spill] sm:$0xff] }
  0xdc   :  { %1198 = vtanh.f32 %v854_v14  ;;  %v870_v3 = vadd.f32 %v868_v55, %v866_v40  ;;  %v881_v32 = vand.u32 2147483647, %v879_v4  ;;  %v882_v16 = vand.u32 2147483647, %v880_v38 }
  0xdd   :  { %v871_v46 = vadd.f32 %v869_v18, %v2602_v11  ;;  %v886_v50 = vsub.f32 %v1183_v22, %v1211_v44  ;;  %v887_v60 = vand.u32 2147483647, %v885_v1  ;;  %v891_v49 = vsub.f32 %v1185_v48, %v1212_v8 }
  0xde   :  { %v872_v47 = vadd.f32 %v870_v3, %v2602_v11  ;;  %v883_v20 = vadd.f32 %v881_v32, %v877_v2  ;;  %v884_v6 = vadd.f32 %v882_v16, %v878_v29  ;;  %v892_v63 = vsub.f32 %v1187_v41, %v1213_v61 }
  0xdf   :  { %v1189_v37 = vpop.eup %1188  ;;  %v723_v30 = vsub.f32 %v2260_v36, %v2371_v56  ;;  %1200 = vtanh.f32 %v871_v46  ;;  %v888_v22 = vand.u32 2147483647, %v886_v50  ;;  %v893_v21 = vand.u32 2147483647, %v891_v49 }
  0xe0   :  { %v1191_v11 = vpop.eup %1190  ;;  %v724_v5 = vsub.f32 %v2266_v19, %v1215_v15  ;;  %1202 = vtanh.f32 %v872_v47  ;;  %v889_v33 = vadd.f32 %v887_v60, %v883_v20  ;;  %v894_v10 = vand.u32 2147483647, %v892_v63  ;;  %v1216_v36 = vld [vmem:[%s2419_s1] ss:$4 sm:$0x3] }
  0xe1   :  { %v1061_v31 = vadd.f32 -1.0, %v2148_v59  ;;  %v1062_v43 = vadd.f32 -1.0, %v2158_v9  ;;  %v890_v25 = vadd.f32 %v888_v22, %v884_v6  ;;  %v897_v55 = vsub.f32 %v1189_v37, %v1216_v36  ;;  %v1217_v59 = vld [vmem:[%s2419_s1 + $0x8] ss:$4 sm:$0x3] }
  0xe2   :  { %v2635_v17 = vsub.f32 %v2118_v53, %v1629_v54  ;;  %v2636_v19 = vsub.f32 %v2121_v34, %v1642_v62  ;;  %v895_v14 = vadd.f32 %v893_v21, %v889_v33  ;;  %v898_v9 = vsub.f32 %v1191_v11, %v1217_v59 }
  0xe3   :  { %v1193_v39 = vpop.eup %1192  ;;  %v699_v24 = vadd.f32 %v2637_v27, %v2198_v51  ;;  %v721_v48 = vadd.f32 %v2239_v42, %v2229_v35  ;;  %v725_v40 = vand.u32 2147483647, %v723_v30  ;;  %v896_v53 = vadd.f32 %v894_v10, %v890_v25  ;;  %v1219_v51 = vld [vmem:[%s2419_s1 + $0x9] ss:$4 sm:$0x3]  ;;  %v2638_v42 = vld [vmem:[#allocation18_spill] sm:$0xff] }
  0xe4   :  { %v703_v58 = vand.u32 2147483647, %v2635_v17  ;;  %v704_v23 = vand.u32 2147483647, %v2636_v19  ;;  %v1195_v54 = vpop.eup %1194  ;;  %v700_v62 = vadd.f32 %v2202_v57, %v2200_v28  ;;  %v722_v34 = vadd.f32 %v2246_v0, %v2236_v45 }
  0xe5   :  { %v726_v2 = vand.u32 2147483647, %v724_v5  ;;  %v901_v4 = vsub.f32 %v1193_v39, %v1218_v52  ;;  %v899_v13 = vand.u32 2147483647, %v897_v55  ;;  %v902_v35 = vsub.f32 %v1195_v54, %v1219_v51 }
  0xe6   :  { %v453_v38 = vmul.f32 %v2638_v42, %v2638_v42  ;;  %v900_v41 = vand.u32 2147483647, %v898_v9  ;;  %v457_v28 = vmul.f32 %v1061_v31, %v1061_v31  ;;  %v705_v18 = vadd.f32 %v703_v58, %v699_v24 }
  0xe7   :  { %v903_v57 = vand.u32 2147483647, %v901_v4  ;;  %v727_v45 = vadd.f32 %v725_v40, %v721_v48  ;;  %v904_v0 = vand.u32 2147483647, %v902_v35  ;;  %v454_v1 = vmul.f32 %v2639_v12, %v2639_v12 }
  0xe8   :  { %v1197_v29 = vpop.eup %1196  ;;  %v458_v3 = vmul.f32 %v1062_v43, %v1062_v43  ;;  %v706_v32 = vadd.f32 %v704_v23, %v700_v62  ;;  %v728_v16 = vadd.f32 %v726_v2, %v722_v34  ;;  %v459_v49 = vadd.f32 %v457_v28, %v453_v38 }
  0xe9   :  { %v1199_v46 = vpop.eup %1198  ;;  %v905_v44 = vadd.f32 %v903_v57, %v899_v13  ;;  %v907_v50 = vsub.f32 %v1197_v29, %v2213_v26  ;;  %v906_v60 = vadd.f32 %v904_v0, %v900_v41  ;;  %v729_v47 = vadd.f32 %v727_v45, %v705_v18 }
  0xea   :  { %v908_v8 = vsub.f32 %v1199_v46, %v2219_v7  ;;  %v460_v61 = vadd.f32 %v458_v3, %v454_v1  ;;  %v730_v63 = vadd.f32 %v728_v16, %v706_v32  ;;  %v921_v10 = vmul.f32 0.001953125, %v459_v49 }
  0xeb   :  { %v909_v20 = vand.u32 2147483647, %v907_v50  ;;  %v923_v31 = vmul.f32 4.8828126e-05, %v729_v47  ;;  %v1306_v7 = vmov 1966171168   ;;  %v2640_v39 = vlaneseq }
  0xec   :  { %v1201_v6 = vpop.eup %1200  ;;  %v910_v37 = vand.u32 2147483647, %v908_v8  ;;  %v922_v43 = vmul.f32 0.001953125, %v460_v61  ;;  %v924_v25 = vmul.f32 4.8828126e-05, %v730_v63  ;;  %v935_v36 = vunpack.c.l.s4 %v1306_v7 }
  0xed   :  { %v1203_v30 = vpop.eup %1202  ;;  %v911_v22 = vadd.f32 %v909_v20, %v905_v44  ;;  %v913_v21 = vsub.f32 %v1201_v6, %v2371_v56  ;;  %v925_v19 = vadd.f32 %v923_v31, %v921_v10  ;;  %v938_v27 = vshrl.u32 %v2640_v39, 7 }
  0xee   :  { %v912_v11 = vadd.f32 %v910_v37, %v906_v60  ;;  %v914_v5 = vsub.f32 %v1203_v30, %v1215_v15  ;;  %v926_v59 = vadd.f32 %v924_v25, %v922_v43  ;;  %v936_v9 = vunpack.c.0.s8 %v935_v36 }
  0xef   :  { %v915_v33 = vand.u32 2147483647, %v913_v21 }
  0xf0   :  { %v916_v26 = vand.u32 2147483647, %v914_v5  ;;  %v939_v40 = vsub.s32 %v936_v9, %v938_v27 }
  0xf1   :  { %v917_v55 = vadd.f32 %v915_v33, %v911_v22 }
  0xf2   :  { %v918_v17 = vadd.f32 %v916_v26, %v912_v11 }
  0xf3   :  { %v919_v58 = vadd.f32 %v917_v55, %v895_v14 }
  0xf4   :  { %v920_v23 = vadd.f32 %v918_v17, %v896_v53 }
  0xf5   :  { %v927_v56 = vmul.f32 0.0048828125, %v919_v58 }
  0xf6   :  { %v928_v24 = vmul.f32 0.0048828125, %v920_v23 }
  0xf7   :  { %v929_v15 = vadd.f32 %v927_v56, %v925_v19 }
  0xf8   :  { %v930_v48 = vadd.f32 %v928_v24, %v926_v59 }
  0xfa   :  { %v933_v54 = vcombine.low %v929_v15, %v930_v48 }
  0xfc   :  { %v940_v62 = vrot.slane %v933_v54, %v939_v40 }
  0xfe   :  { %v941_v34 = vcombine.high %v940_v62, %v940_v62  ;;  %v948_v2 = vrot.slane %v940_v62, %v939_v40 }
 0x100   :  { %v955_v52 = vrot.slane %v941_v34, %v939_v40  ;;  %v959_v4 = vsel %vm958_vm1, %v948_v2, 0.0 }
 0x102   :  { %v960_v13 = vsel %vm958_vm1, %v955_v52, 0.0 }
 0x103   :  { %v961_v14 = vadd.f32 %v960_v13, %v959_v4 }
 0x105   :  { %962 = vadd.xlane.f32.xlu0 %v961_v14 }
 0x18e   :  { %v963_v53 = vpop.xlane.xlu0 %962 }
 0x18f   :  { %v964_v51 = vrot.slane %v963_v53, 4 }
 0x191   :  { %v965_v35 = vadd.f32 %v964_v51, %v963_v53 }
 0x193   :  { %v966_v42 = vrot.slane %v965_v35, 2 }
 0x195   :  { %v967_v38 = vadd.f32 %v966_v42, %v965_v35 }
 0x197   :  { %v968_v41 = vrot.slane %v967_v38, 1 }
 0x199   :  { %v969_v57 = vadd.f32 %v968_v41, %v967_v38 }
 0x19b   :  { %1099 = vpush %v969_v57 }
 0x1cc   :  { %s1100_s1 = spop %1099 }
 0x1cd   :  { %v971_v28 = vstv %s1100_s1 }
 0x1ce   :  { %972 = vst [vmem:[%s2428_s10] sm:$0xff] %v971_v28 }
 0x1cf   :  { %985 = vsyncpa [#allocation5], 1 }
 0x1d0   :  { %986 = vsyncpa [#allocation7], 1 }
 0x1d1   :  { %987 = vsyncpa [#allocation10], 1 }
 0x1d2   :  { %988 = vsyncpa [#allocation13], 1 }

</bundles_post_ra>
